<compile_context>
chip_gen: v7x
topology: tpu7x:2x2x1
jax: 0.10.0
libtpu: 0.0.40
codegen_flags: <defaults>
</compile_context>

<pallas_src>
import functools
import math

import jax
import jax.numpy as jnp
from jax import lax
from jax.experimental import pallas as pl
from jax.experimental.pallas import tpu as pltpu


# ---------------------------------------------------------------------------
# Helpers
# ---------------------------------------------------------------------------
def _round_up(x, m):
    return ((x + m - 1) // m) * m


def _vmem_limit_bytes():
    """Scoped-VMEM request with headroom for Mosaic-internal scratch.

    v5e/v6e have 128 MiB of physical VMEM per TensorCore, v7x only 64 MiB, so a
    flat 64 MiB request would leave no headroom there.  5/8 of physical, capped
    at 64 MiB, gives ~40 MiB on v7x and 64 MiB on v5e/v6e.
    """
    try:
        cap = int(pltpu.get_tpu_info().vmem_capacity_bytes)
    except Exception:                      # conservative fallback (v7x per-TC size)
        cap = 64 * 1024 * 1024
    return min((cap * 5) // 8, 64 * 1024 * 1024)


def _tile_and_pad(dim, target, align):
    """Pick (tile, padded_dim).

    Preference order: full dim (small arrays, always a legal full-extent block),
    an `align`-aligned divisor of `dim` <= target (no padding), otherwise the
    aligned target tile with `dim` padded up to a multiple of it — so awkward
    lengths never regress to one giant full-extent block.
    """
    if dim <= target:
        return dim, dim
    t = (target // align) * align
    while t >= align:
        if dim % t == 0:
            return t, dim
        t -= align
    t = (target // align) * align
    return t, _round_up(dim, t)


# ---------------------------------------------------------------------------
# Tiled linear:  y = x @ W + b      (W already (in, out); b (out,))
# ---------------------------------------------------------------------------
def _linear_kernel(x_ref, w_ref, b_ref, o_ref, acc_ref, *, cast_lhs):
    @pl.when(pl.program_id(2) == 0)
    def _():
        acc_ref[...] = jnp.zeros_like(acc_ref)

    lhs = x_ref[...]
    if cast_lhs:
        # bf16 weights + f32 activations: run the MXU in the weight dtype
        # (full rate on all generations), accumulate in f32.
        lhs = lhs.astype(w_ref.dtype)
    acc_ref[...] += jnp.dot(lhs, w_ref[...], preferred_element_type=jnp.float32)

    @pl.when(pl.program_id(2) == pl.num_programs(2) - 1)
    def _():
        o_ref[...] = (acc_ref[...] + b_ref[...].astype(jnp.float32)).astype(o_ref.dtype)


def pallas_linear(x2d, w, b):
    """x2d: (M, K), w: (K, N) [pre-transposed at pack time], b: (N,) -> (M, N).

    Non tile-divisible dims are zero-padded (exactly correct for a matmul) and
    the output sliced back, so blocks never become huge full-extent tiles.
    """
    m, k = x2d.shape
    kw, n = w.shape
    assert k == kw
    # 512-class tiles: weights are re-read M/tm times and activations N/tn times
    # from HBM, so bigger tm/tn directly cuts HBM traffic (biggest win on v5e);
    # VMEM stays well under ~16 MiB so it also fits v7x.
    tm, mp = _tile_and_pad(m, 512, 16)
    tn, np_ = _tile_and_pad(n, 512, 128)
    tk, kp = _tile_and_pad(k, 512, 128)

    if mp != m or kp != k:
        x2d = jnp.pad(x2d, ((0, mp - m), (0, kp - k)))
    if kp != k or np_ != n:
        w = jnp.pad(w, ((0, kp - k), (0, np_ - n)))
    b2 = b.reshape(1, n)
    if np_ != n:
        b2 = jnp.pad(b2, ((0, 0), (0, np_ - n)))

    cast_lhs = x2d.dtype != w.dtype

    out = pl.pallas_call(
        functools.partial(_linear_kernel, cast_lhs=cast_lhs),
        out_shape=jax.ShapeDtypeStruct((mp, np_), x2d.dtype),
        grid=(mp // tm, np_ // tn, kp // tk),
        in_specs=[
            pl.BlockSpec((tm, tk), lambda i, j, kk: (i, kk)),
            pl.BlockSpec((tk, tn), lambda i, j, kk: (kk, j)),
            pl.BlockSpec((1, tn), lambda i, j, kk: (0, j)),
        ],
        out_specs=pl.BlockSpec((tm, tn), lambda i, j, kk: (i, j)),
        scratch_shapes=[pltpu.VMEM((tm, tn), jnp.float32)],
        compiler_params=pltpu.CompilerParams(
            dimension_semantics=("parallel", "parallel", "arbitrary"),
            vmem_limit_bytes=_vmem_limit_bytes(),
        ),
    )(x2d, w, b2)

    if mp != m or np_ != n:
        out = out[:m, :n]
    return out


# ---------------------------------------------------------------------------
# Flash attention (online softmax).  Grid = (batch, head, q_tile, kv_tile).
# The same kernel body serves the "folded" path (2D fused-activation arrays)
# and the fallback path (3D (B*H, S, D) arrays with a squeezed leading block).
# ---------------------------------------------------------------------------
def _flash_attn_kernel(q_ref, k_ref, v_ref, o_ref, m_sc, l_sc, acc_sc, *,
                       sm_scale, causal, tq, tk, kv_valid, pad_k, exp_dtype):
    qi = pl.program_id(2)
    ki = pl.program_id(3)
    nk = pl.num_programs(3)

    @pl.when(ki == 0)
    def _init():
        m_sc[...] = jnp.full_like(m_sc, -1e30)
        l_sc[...] = jnp.zeros_like(l_sc)
        acc_sc[...] = jnp.zeros_like(acc_sc)

    def _update(apply_causal, apply_kv_mask):
        # Scale q once per (tq, D) tile instead of the (tq, tk) score matrix.
        q = q_ref[...] * jnp.asarray(sm_scale, dtype=q_ref.dtype)
        s = lax.dot_general(q, k_ref[...], (((1,), (1,)), ((), ())),
                            preferred_element_type=jnp.float32)        # (tq, tk)

        if apply_causal or apply_kv_mask:
            col = ki * tk + lax.broadcasted_iota(jnp.int32, s.shape, 1)
            keep = None
            if apply_causal:
                row = qi * tq + lax.broadcasted_iota(jnp.int32, s.shape, 0)
                keep = col <= row
            if apply_kv_mask:
                kvm = col < kv_valid
                keep = kvm if keep is None else jnp.logical_and(keep, kvm)
            s = jnp.where(keep, s, -1e30)

        m_prev = m_sc[...]
        m_new = jnp.maximum(m_prev, jnp.max(s, axis=-1, keepdims=True))
        alpha = jnp.exp(m_prev - m_new)
        # Optionally do the large exp in bf16 (EUP ~2x f32 rate on v6e/v7x);
        # row-sum / accumulators stay f32.
        p = jnp.exp((s - m_new).astype(exp_dtype))
        l_sc[...] = alpha * l_sc[...] + jnp.sum(p.astype(jnp.float32), axis=-1,
                                                keepdims=True)
        acc_sc[...] = alpha * acc_sc[...] + jnp.dot(
            p.astype(v_ref.dtype), v_ref[...], preferred_element_type=jnp.float32)
        m_sc[...] = m_new

    if causal:
        q0 = qi * tq
        k0 = ki * tk
        fully_valid = (k0 + (tk - 1)) <= q0           # tile entirely on/under diagonal
        dead = k0 > (q0 + (tq - 1))                   # tile entirely above diagonal
        if pad_k:
            # Force the last kv tile through the masked branch (padded keys).
            fully_valid = jnp.logical_and(fully_valid, ki != nk - 1)

        @pl.when(fully_valid)
        def _full():
            _update(False, False)

        @pl.when(jnp.logical_and(jnp.logical_not(fully_valid), jnp.logical_not(dead)))
        def _edge():
            _update(True, pad_k)
        # "dead" tiles: no MXU/VPU/EUP work at all (DMA of the tile still happens).
    else:
        if pad_k:
            @pl.when(ki == nk - 1)
            def _tail():
                _update(False, True)

            @pl.when(ki != nk - 1)
            def _body():
                _update(False, False)
        else:
            _update(False, False)

    @pl.when(ki == nk - 1)
    def _finalize():
        # approx=True (EUP vrcp) is essentially free but adds ~1e-3 relative error;
        # exact reciprocal kept for parity with the reference (finalize-only cost).
        inv = pl.reciprocal(l_sc[...], approx=False)
        o_ref[...] = (acc_sc[...] * inv).astype(o_ref.dtype)


def _attention_call(q_arr, k_arr, v_arr, *, grid, q_spec, k_spec, v_spec, o_spec,
                    out_shape, tq, tk, d, sm_scale, causal, kv_valid, pad_k,
                    exp_dtype):
    kernel = functools.partial(
        _flash_attn_kernel, sm_scale=sm_scale, causal=causal, tq=tq, tk=tk,
        kv_valid=kv_valid, pad_k=pad_k, exp_dtype=exp_dtype)
    # TODO(synk): if profiling on v5e shows exposed k/v DMA for small D, add
    # pipeline_mode=pl.Buffered(3) on the k/v BlockSpecs.
    return pl.pallas_call(
        kernel,
        out_shape=out_shape,
        grid=grid,
        in_specs=[q_spec, k_spec, v_spec],
        out_specs=o_spec,
        scratch_shapes=[
            pltpu.VMEM((tq, 1), jnp.float32),    # running max m
            pltpu.VMEM((tq, 1), jnp.float32),    # running denominator l
            pltpu.VMEM((tq, d), jnp.float32),    # f32 output accumulator
        ],
        compiler_params=pltpu.CompilerParams(
            dimension_semantics=("parallel", "parallel", "parallel", "arbitrary"),
            vmem_limit_bytes=_vmem_limit_bytes(),
        ),
    )(q_arr, k_arr, v_arr)


def _attention_folded(q_src, kv_src, *, B, S, Sk, H, D, tq, tk, k_col0, v_col0,
                      sm_scale, causal, exp_dtype):
    """Heads selected via BlockSpec column blocks of the fused activations.

    q_src:  (B*S, *)  with q at column blocks [0, H)
    kv_src: (B*Sk, *) with k at column blocks [k_col0, k_col0+H),
                           v at column blocks [v_col0, v_col0+H)
    Output: (B*S, E) written in lane-dense (tq, D) windows (D % 128 == 0).
    """
    E = H * D
    nq = S // tq
    nk = Sk // tk
    q_spec = pl.BlockSpec((tq, D), lambda b, h, qi, ki: (b * nq + qi, h))
    k_spec = pl.BlockSpec((tk, D), lambda b, h, qi, ki: (b * nk + ki, k_col0 + h))
    v_spec = pl.BlockSpec((tk, D), lambda b, h, qi, ki: (b * nk + ki, v_col0 + h))
    o_spec = pl.BlockSpec((tq, D), lambda b, h, qi, ki: (b * nq + qi, h))
    out_shape = jax.ShapeDtypeStruct((B * S, E), q_src.dtype)
    return _attention_call(q_src, kv_src, kv_src, grid=(B, H, nq, nk),
                           q_spec=q_spec, k_spec=k_spec, v_spec=v_spec,
                           o_spec=o_spec, out_shape=out_shape, tq=tq, tk=tk, d=D,
                           sm_scale=sm_scale, causal=causal, kv_valid=Sk,
                           pad_k=False, exp_dtype=exp_dtype)


def _attention_heads(q, k, v, *, B, H, sm_scale, causal, exp_dtype):
    """Fallback path: q/k/v already split to (B*H, S, D); pads non-divisible seq."""
    BH, S, D = q.shape
    Sk = k.shape[1]
    tq, sqp = _tile_and_pad(S, 256, 8)
    tk, skp = _tile_and_pad(Sk, 512, 8)
    if sqp != S:
        q = jnp.pad(q, ((0, 0), (0, sqp - S), (0, 0)))
    if skp != Sk:
        k = jnp.pad(k, ((0, 0), (0, skp - Sk), (0, 0)))
        v = jnp.pad(v, ((0, 0), (0, skp - Sk), (0, 0)))
    nq, nk = sqp // tq, skp // tk

    q_spec = pl.BlockSpec((None, tq, D), lambda b, h, qi, ki: (b * H + h, qi, 0))
    kv_map = lambda b, h, qi, ki: (b * H + h, ki, 0)
    k_spec = pl.BlockSpec((None, tk, D), kv_map)
    v_spec = pl.BlockSpec((None, tk, D), kv_map)
    o_spec = pl.BlockSpec((None, tq, D), lambda b, h, qi, ki: (b * H + h, qi, 0))
    out_shape = jax.ShapeDtypeStruct((BH, sqp, D), q.dtype)

    o = _attention_call(q, k, v, grid=(B, H, nq, nk),
                        q_spec=q_spec, k_spec=k_spec, v_spec=v_spec, o_spec=o_spec,
                        out_shape=out_shape, tq=tq, tk=tk, d=D, sm_scale=sm_scale,
                        causal=causal, kv_valid=Sk, pad_k=(skp != Sk),
                        exp_dtype=exp_dtype)
    return o[:, :S, :] if sqp != S else o


# ---------------------------------------------------------------------------
# Parameters: mirrors the module's Triton xavier init (uniform[-1,1]*gain,
# gain = 1/sqrt(fan_in+fan_out), zero bias), then packed ONCE for the kernels.
# ---------------------------------------------------------------------------
def init_params(key, embed_dim, dtype=jnp.float32):
    gain = 1.0 / math.sqrt(embed_dim + embed_dim)
    ks = jax.random.split(key, 4)

    def w(kk):   # stored PyTorch-style as (out_features, in_features)
        return (jax.random.uniform(kk, (embed_dim, embed_dim), jnp.float32,
                                   -1.0, 1.0) * gain).astype(dtype)

    z = jnp.zeros((embed_dim,), dtype)
    return {"wq": w(ks[0]), "bq": z, "wk": w(ks[1]), "bk": z,
            "wv": w(ks[2]), "bv": z, "wo": w(ks[3]), "bo": z}


def pack_params(params, weight_dtype=None):
    """One-time packing: (out,in) -> (in,out) transpose + QKV / KV fusion.

    Done outside the forward so there is no per-call O(E^2) concat/transpose HBM
    traffic.  `weight_dtype=jnp.bfloat16` enables full-rate bf16 MXU projections
    (f32 accumulation kept in-kernel).
    """
    def cvt(w_out_in):
        wt = w_out_in.T
        return wt.astype(weight_dtype) if weight_dtype is not None else wt

    wq, wk, wv, wo = params["wq"], params["wk"], params["wv"], params["wo"]
    bq, bk, bv, bo = params["bq"], params["bk"], params["bv"], params["bo"]
    return {
        "w_qkv": cvt(jnp.concatenate([wq, wk, wv], axis=0)),   # (E, 3E)
        "b_qkv": jnp.concatenate([bq, bk, bv], axis=0),
        "w_q": cvt(wq), "b_q": bq,
        "w_kv": cvt(jnp.concatenate([wk, wv], axis=0)),        # (E, 2E)
        "b_kv": jnp.concatenate([bk, bv], axis=0),
        "w_o": cvt(wo), "b_o": bo,
    }


# ---------------------------------------------------------------------------
# Forward wrapper
# ---------------------------------------------------------------------------
def flash_mla_attention_forward(x, packed, num_heads, *, context=None,
                                causal=False, sm_scale=0.5, exp_in_bf16=None):
    B, S, E = x.shape
    H = num_heads
    D = E // H
    assert H * D == E, "embed_dim must be divisible by num_heads"
    if exp_in_bf16 is None:
        exp_in_bf16 = (x.dtype == jnp.bfloat16)
    exp_dtype = jnp.bfloat16 if exp_in_bf16 else jnp.float32

    x2 = x.reshape(B * S, E)
    if context is None:
        # Fused QKV projection: x is read from HBM once for all three projections.
        qkv = pallas_linear(x2, packed["w_qkv"], packed["b_qkv"])     # (B*S, 3E)
        Bc, Sk = B, S
        q_src, kv_src = qkv, qkv
        k_col0, v_col0 = H, 2 * H
    else:
        Bc, Sk, Ec = context.shape
        assert Ec == E and Bc == B
        q_src = pallas_linear(x2, packed["w_q"], packed["b_q"])       # (B*S, E)
        kv_src = pallas_linear(context.reshape(Bc * Sk, E),
                               packed["w_kv"], packed["b_kv"])        # (B*Sk, 2E)
        k_col0, v_col0 = 0, H

    tq, sqp = _tile_and_pad(S, 256, 8)
    tk, skp = _tile_and_pad(Sk, 512, 8)
    folded = (D % 128 == 0 and sqp == S and skp == Sk
              and tq % 8 == 0 and tk % 8 == 0)

    if folded:
        # Head split/merge + QKV slicing folded into the attention BlockSpecs:
        # no XLA transpose/slice round trips, lane-dense (D >= 128) stores.
        o2 = _attention_folded(q_src, kv_src, B=B, S=S, Sk=Sk, H=H, D=D,
                               tq=tq, tk=tk, k_col0=k_col0, v_col0=v_col0,
                               sm_scale=sm_scale, causal=causal,
                               exp_dtype=exp_dtype)
    else:
        # TODO(synk): for D % 128 != 0 (or non tile-aligned sequences) the head
        # fold would need multi-head blocks or D padded to 128 inside the kernel;
        # fall back to XLA slices + head transposes here.
        if context is None:
            q2, k2, v2 = q_src[:, :E], q_src[:, E:2 * E], q_src[:, 2 * E:]
        else:
            q2 = q_src
            k2, v2 = kv_src[:, :E], kv_src[:, E:]

        def split(t, b, s):
            return t.reshape(b, s, H, D).transpose(0, 2, 1, 3).reshape(b * H, s, D)

        o = _attention_heads(split(q2, B, S), split(k2, Bc, Sk), split(v2, Bc, Sk),
                             B=B, H=H, sm_scale=sm_scale, causal=causal,
                             exp_dtype=exp_dtype)
        o2 = o.reshape(B, H, S, D).transpose(0, 2, 1, 3).reshape(B * S, E)

    out = pallas_linear(o2, packed["w_o"], packed["b_o"])
    # TODO(synk): the reference's external additive `mask` argument goes into the
    # opaque Flash_fwd_mla_params; only the default mask=None path is implemented.
    # Dropout / GradScaler / dist all-reduce are training-only and omitted.
    return out.reshape(B, S, E)


# ---------------------------------------------------------------------------
# Pure-jnp reference (self-attention, mask=None) for correctness checking.
# ---------------------------------------------------------------------------
def _reference_forward(x, packed, num_heads, *, causal=False, sm_scale=0.5):
    B, S, E = x.shape
    H = num_heads
    D = E // H
    x2 = x.reshape(B * S, E).astype(jnp.float32)
    qkv = x2 @ packed["w_qkv"].astype(jnp.float32) + packed["b_qkv"].astype(jnp.float32)
    q, k, v = qkv[:, :E], qkv[:, E:2 * E], qkv[:, 2 * E:]

    def heads(t):
        return t.reshape(B, S, H, D).transpose(0, 2, 1, 3)

    q, k, v = heads(q), heads(k), heads(v)
    s = jnp.einsum("bhqd,bhkd->bhqk", q, k) * sm_scale
    if causal:
        mask = jnp.tril(jnp.ones((S, S), dtype=bool))
        s = jnp.where(mask, s, -1e30)
    p = jax.nn.softmax(s, axis=-1)
    o = jnp.einsum("bhqk,bhkd->bhqd", p, v)
    o = o.transpose(0, 2, 1, 3).reshape(B * S, E)
    out = o @ packed["w_o"].astype(jnp.float32) + packed["b_o"].astype(jnp.float32)
    return out.reshape(B, S, E)


# ---------------------------------------------------------------------------
if __name__ == "__main__":
    root = jax.random.PRNGKey(0)

    def run_case(name, seed, *, E, H, B, S, causal):
        kp, kx = jax.random.split(jax.random.fold_in(root, seed))
        params = init_params(kp, E)
        packed = pack_params(params)
        x = jax.random.normal(kx, (B, S, E), jnp.float32)
        fwd = jax.jit(lambda xx: flash_mla_attention_forward(xx, packed, H,
                                                             causal=causal))
        out = jax.block_until_ready(fwd(x))
        ref = _reference_forward(x, packed, H, causal=causal)
        assert out.shape == (B, S, E)
        assert bool(jnp.all(jnp.isfinite(out))), f"{name}: non-finite output"
        err = float(jnp.max(jnp.abs(out - ref)))
        assert err < 2e-3, f"{name}: max abs error {err}"

    # 1) Folded path (head_dim == 128): heads selected via BlockSpec column blocks.
    run_case("folded", 1, E=256, H=2, B=2, S=8, causal=False)
    # 2) Fallback path (head_dim = 8 < 128) with causal tile-gating.
    run_case("fallback_causal", 2, E=32, H=4, B=2, S=8, causal=True)
    # 3) Non tile-divisible sequence: padded q/k/v with in-kernel key masking.
    run_case("padded_tail", 3, E=16, H=2, B=1, S=516, causal=True)

    print("KERNEL_OK")
</pallas_src>

<mosaic_0001>
module attributes {stable_mosaic.version = 11 : i64} {
  func.func @_linear_kernel(%arg0: i32, %arg1: i32, %arg2: i32, %arg3: memref<16x256xf32, #tpu.memory_space<vmem>>, %arg4: memref<256x384xf32, #tpu.memory_space<vmem>>, %arg5: memref<1x384xf32, #tpu.memory_space<vmem>>, %arg6: memref<16x384xf32, #tpu.memory_space<vmem>>, %arg7: memref<16x384xf32, #tpu.memory_space<vmem>>) attributes {dimension_semantics = [#tpu.dimension_semantics<parallel>, #tpu.dimension_semantics<parallel>, #tpu.dimension_semantics<arbitrary>], iteration_bounds = array<i64: 1, 2, 1>, scalar_prefetch = 0 : i64, scratch_operands = 1 : i64, tpu.core_type = #tpu.core_type<tc>, window_params = [{transform_indices = @transform_0, window_bounds = array<i64: 16, 256>}, {transform_indices = @transform_1, window_bounds = array<i64: 256, 384>}, {transform_indices = @transform_2, window_bounds = array<i64: 1, 384>}, {transform_indices = @transform_3, window_bounds = array<i64: 16, 384>}]} {
    %c0_i32 = arith.constant 0 : i32
    %0 = arith.cmpi eq, %arg2, %c0_i32 : i32
    %1 = arith.extui %0 : i1 to i32
    %c0_i32_0 = arith.constant 0 : i32
    %2 = arith.cmpi ne, %1, %c0_i32_0 : i32
    scf.if %2 {
      %cst_10 = arith.constant 0.000000e+00 : f32
      %12 = vector.broadcast %cst_10 : f32 to vector<16x384xf32>
      %c0_11 = arith.constant 0 : index
      %c0_12 = arith.constant 0 : index
      %13 = vector.load %arg7[%c0_11, %c0_12] : memref<16x384xf32, #tpu.memory_space<vmem>>, vector<16x384xf32>
      tpu.vector_store %arg7[%c0_11, %c0_12], %12 {strides = array<i32>} : memref<16x384xf32, #tpu.memory_space<vmem>>, vector<16x384xf32>,
    } else {
    }
    %c0 = arith.constant 0 : index
    %c0_1 = arith.constant 0 : index
    %3 = vector.load %arg3[%c0, %c0_1] : memref<16x256xf32, #tpu.memory_space<vmem>>, vector<16x256xf32>
    %c0_2 = arith.constant 0 : index
    %c0_3 = arith.constant 0 : index
    %4 = vector.load %arg7[%c0_2, %c0_3] : memref<16x384xf32, #tpu.memory_space<vmem>>, vector<16x384xf32>
    %c0_4 = arith.constant 0 : index
    %c0_5 = arith.constant 0 : index
    %5 = vector.load %arg4[%c0_4, %c0_5] : memref<256x384xf32, #tpu.memory_space<vmem>>, vector<256x384xf32>
    %cst = arith.constant dense<0.000000e+00> : vector<16x384xf32>
    %6 = tpu.matmul %3, %5, %cst {dimension_numbers = #tpu.dot_dimension_numbers<[1], [0], [0], [1], [0, 0, 1, 1], [], []>} : vector<16x256xf32>, vector<256x384xf32>, vector<16x384xf32> -> vector<16x384xf32>
    %7 = arith.addf %4, %6 : vector<16x384xf32>
    %c0_6 = arith.constant 0 : index
    %c0_7 = arith.constant 0 : index
    %8 = vector.load %arg7[%c0_6, %c0_7] : memref<16x384xf32, #tpu.memory_space<vmem>>, vector<16x384xf32>
    tpu.vector_store %arg7[%c0_6, %c0_7], %7 {strides = array<i32>} : memref<16x384xf32, #tpu.memory_space<vmem>>, vector<16x384xf32>,
    %c0_i32_8 = arith.constant 0 : i32
    %9 = arith.cmpi eq, %arg2, %c0_i32_8 : i32
    %10 = arith.extui %9 : i1 to i32
    %c0_i32_9 = arith.constant 0 : i32
    %11 = arith.cmpi ne, %10, %c0_i32_9 : i32
    scf.if %11 {
      %c0_10 = arith.constant 0 : index
      %c0_11 = arith.constant 0 : index
      %12 = vector.load %arg7[%c0_10, %c0_11] : memref<16x384xf32, #tpu.memory_space<vmem>>, vector<16x384xf32>
      %c0_12 = arith.constant 0 : index
      %c0_13 = arith.constant 0 : index
      %13 = vector.load %arg5[%c0_12, %c0_13] : memref<1x384xf32, #tpu.memory_space<vmem>>, vector<1x384xf32>
      %14 = vector.broadcast %13 : vector<1x384xf32> to vector<16x384xf32>
      %15 = arith.addf %12, %14 : vector<16x384xf32>
      %c0_14 = arith.constant 0 : index
      %c0_15 = arith.constant 0 : index
      %16 = vector.load %arg6[%c0_14, %c0_15] : memref<16x384xf32, #tpu.memory_space<vmem>>, vector<16x384xf32>
      tpu.vector_store %arg6[%c0_14, %c0_15], %15 {strides = array<i32>} : memref<16x384xf32, #tpu.memory_space<vmem>>, vector<16x384xf32>,
    } else {
    }
    return
  }
  func.func @transform_0(%arg0: i32, %arg1: i32, %arg2: i32) -> (i32, i32) {
    %c0_i32 = arith.constant 0 : i32
    return %arg0, %arg2 : i32, i32
  }
  func.func @transform_1(%arg0: i32, %arg1: i32, %arg2: i32) -> (i32, i32) {
    %c0_i32 = arith.constant 0 : i32
    return %arg2, %arg1 : i32, i32
  }
  func.func @transform_2(%arg0: i32, %arg1: i32, %arg2: i32) -> (i32, i32) {
    %c0_i32 = arith.constant 0 : i32
    %c0_i32_0 = arith.constant 0 : i32
    return %c0_i32, %arg1 : i32, i32
  }
  func.func @transform_3(%arg0: i32, %arg1: i32, %arg2: i32) -> (i32, i32) {
    %c0_i32 = arith.constant 0 : i32
    return %arg0, %arg1 : i32, i32
  }
}

module attributes {stable_mosaic.version = 11 : i64} {
  func.func @_flash_attn_kernel(%arg0: i32, %arg1: i32, %arg2: i32, %arg3: i32, %arg4: memref<8x128xf32, #tpu.memory_space<vmem>>, %arg5: memref<8x128xf32, #tpu.memory_space<vmem>>, %arg6: memref<8x128xf32, #tpu.memory_space<vmem>>, %arg7: memref<8x128xf32, #tpu.memory_space<vmem>>, %arg8: memref<8x1xf32, #tpu.memory_space<vmem>>, %arg9: memref<8x1xf32, #tpu.memory_space<vmem>>, %arg10: memref<8x128xf32, #tpu.memory_space<vmem>>) attributes {dimension_semantics = [#tpu.dimension_semantics<parallel>, #tpu.dimension_semantics<parallel>, #tpu.dimension_semantics<parallel>, #tpu.dimension_semantics<arbitrary>], iteration_bounds = array<i64: 2, 2, 1, 1>, scalar_prefetch = 0 : i64, scratch_operands = 3 : i64, tpu.core_type = #tpu.core_type<tc>, window_params = [{transform_indices = @transform_0, window_bounds = array<i64: 8, 128>}, {transform_indices = @transform_1, window_bounds = array<i64: 8, 128>}, {transform_indices = @transform_2, window_bounds = array<i64: 8, 128>}, {transform_indices = @transform_3, window_bounds = array<i64: 8, 128>}]} {
    %c0_i32 = arith.constant 0 : i32
    %0 = arith.cmpi eq, %arg3, %c0_i32 : i32
    %1 = arith.extui %0 : i1 to i32
    %c0_i32_0 = arith.constant 0 : i32
    %2 = arith.cmpi ne, %1, %c0_i32_0 : i32
    scf.if %2 {
      %cst_24 = arith.constant -1.000000e+30 : f32
      %34 = vector.broadcast %cst_24 : f32 to vector<8x1xf32>
      %c0_25 = arith.constant 0 : index
      %c0_26 = arith.constant 0 : index
      %35 = vector.load %arg8[%c0_25, %c0_26] : memref<8x1xf32, #tpu.memory_space<vmem>>, vector<8x1xf32>
      tpu.vector_store %arg8[%c0_25, %c0_26], %34 {strides = array<i32>} : memref<8x1xf32, #tpu.memory_space<vmem>>, vector<8x1xf32>,
      %cst_27 = arith.constant 0.000000e+00 : f32
      %36 = vector.broadcast %cst_27 : f32 to vector<8x1xf32>
      %c0_28 = arith.constant 0 : index
      %c0_29 = arith.constant 0 : index
      %37 = vector.load %arg9[%c0_28, %c0_29] : memref<8x1xf32, #tpu.memory_space<vmem>>, vector<8x1xf32>
      tpu.vector_store %arg9[%c0_28, %c0_29], %36 {strides = array<i32>} : memref<8x1xf32, #tpu.memory_space<vmem>>, vector<8x1xf32>,
      %cst_30 = arith.constant 0.000000e+00 : f32
      %38 = vector.broadcast %cst_30 : f32 to vector<8x128xf32>
      %c0_31 = arith.constant 0 : index
      %c0_32 = arith.constant 0 : index
      %39 = vector.load %arg10[%c0_31, %c0_32] : memref<8x128xf32, #tpu.memory_space<vmem>>, vector<8x128xf32>
      tpu.vector_store %arg10[%c0_31, %c0_32], %38 {strides = array<i32>} : memref<8x128xf32, #tpu.memory_space<vmem>>, vector<8x128xf32>,
    } else {
    }
    %c0 = arith.constant 0 : index
    %c0_1 = arith.constant 0 : index
    %3 = vector.load %arg4[%c0, %c0_1] : memref<8x128xf32, #tpu.memory_space<vmem>>, vector<8x128xf32>
    %cst = arith.constant 5.000000e-01 : f32
    %4 = vector.broadcast %cst : f32 to vector<8x128xf32>
    %5 = arith.mulf %3, %4 : vector<8x128xf32>
    %c0_2 = arith.constant 0 : index
    %c0_3 = arith.constant 0 : index
    %6 = vector.load %arg5[%c0_2, %c0_3] : memref<8x128xf32, #tpu.memory_space<vmem>>, vector<8x128xf32>
    %cst_4 = arith.constant dense<0.000000e+00> : vector<8x8xf32>
    %7 = tpu.matmul %5, %6, %cst_4 {dimension_numbers = #tpu.dot_dimension_numbers<[1], [1], [0], [0], [0, 0, 1, 0], [], []>} : vector<8x128xf32>, vector<8x128xf32>, vector<8x8xf32> -> vector<8x8xf32>
    %c0_5 = arith.constant 0 : index
    %c0_6 = arith.constant 0 : index
    %8 = vector.load %arg8[%c0_5, %c0_6] : memref<8x1xf32, #tpu.memory_space<vmem>>, vector<8x1xf32>
    %cst_7 = arith.constant dense<0xFF800000> : vector<8xf32>
    %9 = vector.multi_reduction <maximumf>, %7, %cst_7 [1] : vector<8x8xf32> to vector<8xf32>
    %10 = vector.shape_cast %9 : vector<8xf32> to vector<8x1xf32>
    %11 = arith.maximumf %8, %10 : vector<8x1xf32>
    %12 = arith.subf %8, %11 : vector<8x1xf32>
    %13 = math.exp %12 : vector<8x1xf32>
    %14 = vector.broadcast %11 : vector<8x1xf32> to vector<8x8xf32>
    %15 = arith.subf %7, %14 : vector<8x8xf32>
    %16 = math.exp %15 : vector<8x8xf32>
    %c0_8 = arith.constant 0 : index
    %c0_9 = arith.constant 0 : index
    %17 = vector.load %arg9[%c0_8, %c0_9] : memref<8x1xf32, #tpu.memory_space<vmem>>, vector<8x1xf32>
    %18 = arith.mulf %13, %17 : vector<8x1xf32>
    %cst_10 = arith.constant dense<0.000000e+00> : vector<8xf32>
    %19 = vector.multi_reduction <add>, %16, %cst_10 [1] : vector<8x8xf32> to vector<8xf32>
    %20 = vector.shape_cast %19 : vector<8xf32> to vector<8x1xf32>
    %21 = arith.addf %18, %20 : vector<8x1xf32>
    %c0_11 = arith.constant 0 : index
    %c0_12 = arith.constant 0 : index
    %22 = vector.load %arg9[%c0_11, %c0_12] : memref<8x1xf32, #tpu.memory_space<vmem>>, vector<8x1xf32>
    tpu.vector_store %arg9[%c0_11, %c0_12], %21 {strides = array<i32>} : memref<8x1xf32, #tpu.memory_space<vmem>>, vector<8x1xf32>,
    %c0_13 = arith.constant 0 : index
    %c0_14 = arith.constant 0 : index
    %23 = vector.load %arg10[%c0_13, %c0_14] : memref<8x128xf32, #tpu.memory_space<vmem>>, vector<8x128xf32>
    %24 = vector.broadcast %13 : vector<8x1xf32> to vector<8x128xf32>
    %25 = arith.mulf %24, %23 : vector<8x128xf32>
    %c0_15 = arith.constant 0 : index
    %c0_16 = arith.constant 0 : index
    %26 = vector.load %arg6[%c0_15, %c0_16] : memref<8x128xf32, #tpu.memory_space<vmem>>, vector<8x128xf32>
    %cst_17 = arith.constant dense<0.000000e+00> : vector<8x128xf32>
    %27 = tpu.matmul %16, %26, %cst_17 {dimension_numbers = #tpu.dot_dimension_numbers<[1], [0], [0], [1], [0, 0, 1, 1], [], []>} : vector<8x8xf32>, vector<8x128xf32>, vector<8x128xf32> -> vector<8x128xf32>
    %28 = arith.addf %25, %27 : vector<8x128xf32>
    %c0_18 = arith.constant 0 : index
    %c0_19 = arith.constant 0 : index
    %29 = vector.load %arg10[%c0_18, %c0_19] : memref<8x128xf32, #tpu.memory_space<vmem>>, vector<8x128xf32>
    tpu.vector_store %arg10[%c0_18, %c0_19], %28 {strides = array<i32>} : memref<8x128xf32, #tpu.memory_space<vmem>>, vector<8x128xf32>,
    %c0_20 = arith.constant 0 : index
    %c0_21 = arith.constant 0 : index
    %30 = vector.load %arg8[%c0_20, %c0_21] : memref<8x1xf32, #tpu.memory_space<vmem>>, vector<8x1xf32>
    tpu.vector_store %arg8[%c0_20, %c0_21], %11 {strides = array<i32>} : memref<8x1xf32, #tpu.memory_space<vmem>>, vector<8x1xf32>,
    %c0_i32_22 = arith.constant 0 : i32
    %31 = arith.cmpi eq, %arg3, %c0_i32_22 : i32
    %32 = arith.extui %31 : i1 to i32
    %c0_i32_23 = arith.constant 0 : i32
    %33 = arith.cmpi ne, %32, %c0_i32_23 : i32
    scf.if %33 {
      %c0_24 = arith.constant 0 : index
      %c0_25 = arith.constant 0 : index
      %34 = vector.load %arg9[%c0_24, %c0_25] : memref<8x1xf32, #tpu.memory_space<vmem>>, vector<8x1xf32>
      %35 = tpu.reciprocal %34 : vector<8x1xf32> -> vector<8x1xf32>
      %c0_26 = arith.constant 0 : index
      %c0_27 = arith.constant 0 : index
      %36 = vector.load %arg10[%c0_26, %c0_27] : memref<8x128xf32, #tpu.memory_space<vmem>>, vector<8x128xf32>
      %37 = vector.broadcast %35 : vector<8x1xf32> to vector<8x128xf32>
      %38 = arith.mulf %36, %37 : vector<8x128xf32>
      %c0_28 = arith.constant 0 : index
      %c0_29 = arith.constant 0 : index
      %39 = vector.load %arg7[%c0_28, %c0_29] : memref<8x128xf32, #tpu.memory_space<vmem>>, vector<8x128xf32>
      tpu.vector_store %arg7[%c0_28, %c0_29], %38 {strides = array<i32>} : memref<8x128xf32, #tpu.memory_space<vmem>>, vector<8x128xf32>,
    } else {
    }
    return
  }
  func.func @transform_0(%arg0: i32, %arg1: i32, %arg2: i32, %arg3: i32) -> (i32, i32) {
    %c1_i32 = arith.constant 1 : i32
    %0 = arith.muli %arg0, %c1_i32 : i32
    %1 = arith.addi %0, %arg2 : i32
    %c0_i32 = arith.constant 0 : i32
    return %1, %arg1 : i32, i32
  }
  func.func @transform_1(%arg0: i32, %arg1: i32, %arg2: i32, %arg3: i32) -> (i32, i32) {
    %c1_i32 = arith.constant 1 : i32
    %0 = arith.muli %arg0, %c1_i32 : i32
    %1 = arith.addi %0, %arg3 : i32
    %c2_i32 = arith.constant 2 : i32
    %2 = arith.addi %c2_i32, %arg1 : i32
    %c0_i32 = arith.constant 0 : i32
    return %1, %2 : i32, i32
  }
  func.func @transform_2(%arg0: i32, %arg1: i32, %arg2: i32, %arg3: i32) -> (i32, i32) {
    %c1_i32 = arith.constant 1 : i32
    %0 = arith.muli %arg0, %c1_i32 : i32
    %1 = arith.addi %0, %arg3 : i32
    %c4_i32 = arith.constant 4 : i32
    %2 = arith.addi %c4_i32, %arg1 : i32
    %c0_i32 = arith.constant 0 : i32
    return %1, %2 : i32, i32
  }
  func.func @transform_3(%arg0: i32, %arg1: i32, %arg2: i32, %arg3: i32) -> (i32, i32) {
    %c1_i32 = arith.constant 1 : i32
    %0 = arith.muli %arg0, %c1_i32 : i32
    %1 = arith.addi %0, %arg2 : i32
    %c0_i32 = arith.constant 0 : i32
    return %1, %arg1 : i32, i32
  }
}

module attributes {stable_mosaic.version = 11 : i64} {
  func.func @_linear_kernel(%arg0: i32, %arg1: i32, %arg2: i32, %arg3: memref<16x256xf32, #tpu.memory_space<vmem>>, %arg4: memref<256x256xf32, #tpu.memory_space<vmem>>, %arg5: memref<1x256xf32, #tpu.memory_space<vmem>>, %arg6: memref<16x256xf32, #tpu.memory_space<vmem>>, %arg7: memref<16x256xf32, #tpu.memory_space<vmem>>) attributes {dimension_semantics = [#tpu.dimension_semantics<parallel>, #tpu.dimension_semantics<parallel>, #tpu.dimension_semantics<arbitrary>], iteration_bounds = array<i64: 1, 1, 1>, scalar_prefetch = 0 : i64, scratch_operands = 1 : i64, tpu.core_type = #tpu.core_type<tc>, window_params = [{transform_indices = @transform_0, window_bounds = array<i64: 16, 256>}, {transform_indices = @transform_1, window_bounds = array<i64: 256, 256>}, {transform_indices = @transform_2, window_bounds = array<i64: 1, 256>}, {transform_indices = @transform_3, window_bounds = array<i64: 16, 256>}]} {
    %c0_i32 = arith.constant 0 : i32
    %0 = arith.cmpi eq, %arg2, %c0_i32 : i32
    %1 = arith.extui %0 : i1 to i32
    %c0_i32_0 = arith.constant 0 : i32
    %2 = arith.cmpi ne, %1, %c0_i32_0 : i32
    scf.if %2 {
      %cst_10 = arith.constant 0.000000e+00 : f32
      %12 = vector.broadcast %cst_10 : f32 to vector<16x256xf32>
      %c0_11 = arith.constant 0 : index
      %c0_12 = arith.constant 0 : index
      %13 = vector.load %arg7[%c0_11, %c0_12] : memref<16x256xf32, #tpu.memory_space<vmem>>, vector<16x256xf32>
      tpu.vector_store %arg7[%c0_11, %c0_12], %12 {strides = array<i32>} : memref<16x256xf32, #tpu.memory_space<vmem>>, vector<16x256xf32>,
    } else {
    }
    %c0 = arith.constant 0 : index
    %c0_1 = arith.constant 0 : index
    %3 = vector.load %arg3[%c0, %c0_1] : memref<16x256xf32, #tpu.memory_space<vmem>>, vector<16x256xf32>
    %c0_2 = arith.constant 0 : index
    %c0_3 = arith.constant 0 : index
    %4 = vector.load %arg7[%c0_2, %c0_3] : memref<16x256xf32, #tpu.memory_space<vmem>>, vector<16x256xf32>
    %c0_4 = arith.constant 0 : index
    %c0_5 = arith.constant 0 : index
    %5 = vector.load %arg4[%c0_4, %c0_5] : memref<256x256xf32, #tpu.memory_space<vmem>>, vector<256x256xf32>
    %cst = arith.constant dense<0.000000e+00> : vector<16x256xf32>
    %6 = tpu.matmul %3, %5, %cst {dimension_numbers = #tpu.dot_dimension_numbers<[1], [0], [0], [1], [0, 0, 1, 1], [], []>} : vector<16x256xf32>, vector<256x256xf32>, vector<16x256xf32> -> vector<16x256xf32>
    %7 = arith.addf %4, %6 : vector<16x256xf32>
    %c0_6 = arith.constant 0 : index
    %c0_7 = arith.constant 0 : index
    %8 = vector.load %arg7[%c0_6, %c0_7] : memref<16x256xf32, #tpu.memory_space<vmem>>, vector<16x256xf32>
    tpu.vector_store %arg7[%c0_6, %c0_7], %7 {strides = array<i32>} : memref<16x256xf32, #tpu.memory_space<vmem>>, vector<16x256xf32>,
    %c0_i32_8 = arith.constant 0 : i32
    %9 = arith.cmpi eq, %arg2, %c0_i32_8 : i32
    %10 = arith.extui %9 : i1 to i32
    %c0_i32_9 = arith.constant 0 : i32
    %11 = arith.cmpi ne, %10, %c0_i32_9 : i32
    scf.if %11 {
      %c0_10 = arith.constant 0 : index
      %c0_11 = arith.constant 0 : index
      %12 = vector.load %arg7[%c0_10, %c0_11] : memref<16x256xf32, #tpu.memory_space<vmem>>, vector<16x256xf32>
      %c0_12 = arith.constant 0 : index
      %c0_13 = arith.constant 0 : index
      %13 = vector.load %arg5[%c0_12, %c0_13] : memref<1x256xf32, #tpu.memory_space<vmem>>, vector<1x256xf32>
      %14 = vector.broadcast %13 : vector<1x256xf32> to vector<16x256xf32>
      %15 = arith.addf %12, %14 : vector<16x256xf32>
      %c0_14 = arith.constant 0 : index
      %c0_15 = arith.constant 0 : index
      %16 = vector.load %arg6[%c0_14, %c0_15] : memref<16x256xf32, #tpu.memory_space<vmem>>, vector<16x256xf32>
      tpu.vector_store %arg6[%c0_14, %c0_15], %15 {strides = array<i32>} : memref<16x256xf32, #tpu.memory_space<vmem>>, vector<16x256xf32>,
    } else {
    }
    return
  }
  func.func @transform_0(%arg0: i32, %arg1: i32, %arg2: i32) -> (i32, i32) {
    %c0_i32 = arith.constant 0 : i32
    return %arg0, %arg2 : i32, i32
  }
  func.func @transform_1(%arg0: i32, %arg1: i32, %arg2: i32) -> (i32, i32) {
    %c0_i32 = arith.constant 0 : i32
    return %arg2, %arg1 : i32, i32
  }
  func.func @transform_2(%arg0: i32, %arg1: i32, %arg2: i32) -> (i32, i32) {
    %c0_i32 = arith.constant 0 : i32
    %c0_i32_0 = arith.constant 0 : i32
    return %c0_i32, %arg1 : i32, i32
  }
  func.func @transform_3(%arg0: i32, %arg1: i32, %arg2: i32) -> (i32, i32) {
    %c0_i32 = arith.constant 0 : i32
    return %arg0, %arg1 : i32, i32
  }
}

</mosaic_0001>

<bundles_post_ra>
// kernel: _lambda_.4
= control target key start
LH: loop header
LB: loop body
LE: loop exit
PB: predicated region body
PF: predicated region fallthrough
CT: control target
= control target key end

     0   :  { %s797_s12 = smov 0   ;;  %s799_s13 = smov 0   ;;  %s878_s0 = inlined_call_operand.vmem [shape: f32[16,768], index: 0, kind: input, shape index: {}, may-alias: {0,1,2}]   ;;  %s879_s1 = inlined_call_operand.vmem [shape: f32[16,768], index: 1, kind: input, shape index: {}, may-alias: {0,1,2}]   ;;  %s880_s2 = inlined_call_operand.vmem [shape: f32[16,768], index: 2, kind: input, shape index: {}, may-alias: {0,1,2}]   ;;  %s881_s3 = inlined_call_operand.vmem [shape: f32[16,256], index: 3, kind: output, shape index: {}]  }
   0x1   :  { %s801_s14 = smov 0   ;;  %s803_s15 = smov 0  }
   0x2   :  { %s805_s16 = smov 0  }
   0x3 LB: > { %s35_s17 = sadd.s32 1, %s763_s14  ;;  %s39_s18 = sadd.s32 1, %s767_s15  ;;  %s771_s16 = sphi %s805_s16, %s13_s16   ;;  %s767_s15 = sphi %s803_s15, %s885_s15   ;;  %s763_s14 = sphi %s801_s14, %s884_s14   ;;  %s759_s13 = sphi %s799_s13, %s883_s13   ;;  %s755_s12 = sphi %s797_s12, %s882_s12  }
   0x4   : > { %p37_p0 = scmp.ge.s32.totalorder %s35_s17, 2  ;;  %p657_p1 = scmp.ge.s32.totalorder %s771_s16, 1 }
   0x5   : > { %p222_p2 = scmp.lt.s32.totalorder %s771_s16, 5 }
   0x6   : > { %s887_s17 = smov (%p37_p0, %s35_s17), 0  ;;  %s889_s18 = smov (!%p37_p0, %s39_s18), %s767_s15 }
   0x7   : > { %p223_p3 = pnand %p657_p1, %p222_p2  ;;  %p41_p4 = scmp.ge.s32.totalorder %s889_s18, 2 }
   0x8   : > { %p275_p5 = scmp.lt.s32.totalorder (!%p223_p3), %s759_s13, 1  ;;  %s285_s19 = sadd.s32 (!%p223_p3), 2, %s755_s12  ;;  %v773_v0 = vmov (!%p223_p3), 0.0   ;;  %vm774_vm0 = vmmov (!%p223_p3), 0   ;;  %vm322_vm1 = vcmask (!%p223_p3), 7168   ;;  %vm400_vm2 = vcmask (!%p223_p3), 64512  }
   0x9   : > { %s891_s18 = smov (%p41_p4, %s889_s18), 0  ;;  %226 = sbr.rel (%p223_p3) target bundleno = 821 (0x335), region = 32 }
   0xa   : > { %670 = vmatprep.subr.mxu0 (!%p223_p3), %v773_v0  ;;  %p288_p6 = scmp.lt.s32.totalorder (!%p223_p3), %s285_s19, 5  ;;  %672 = vmatprep.mubr.msk.f32.mxu0 (!%p223_p3), %vm774_vm0, %v773_v0  ;;  %p277_p7 = scmp.lt.s32.totalorder (!%p223_p3), %s755_s12, 5  ;;  %v775_v4 = vmov (!%p223_p3), -1e+30   ;;  %324 = vst.msk [vmem:[#allocation3] sm:$0xff] (!%p223_p3), %vm322_vm1, %v773_v0  ;;  %v776_v8 = vmov (!%p223_p3), 0  }
   0xb   : > { %675 = vmatprep.subr.mxu1 (!%p223_p3), %v773_v0  ;;  %677 = vmatprep.mubr.msk.f32.mxu1 (!%p223_p3), %vm774_vm0, %v773_v0  ;;  %323 = vst.msk [vmem:[#allocation2] sm:$0xff] (!%p223_p3), %vm322_vm1, %v775_v4  ;;  %s297_s5 = sadd.s32 (!%p223_p3), 4, %s755_s12  ;;  %p311_p9 = scmp.lt.s32.totalorder (!%p223_p3), %s755_s12, 1 }
   0xc   : > { %725 = vset.pattern.permute.xlu0 (!%p223_p3), %v776_v8  ;;  %726 = vset.pattern.permute.xlu1 (!%p223_p3), %v776_v8  ;;  %p300_p8 = scmp.lt.s32.totalorder (!%p223_p3), %s297_s5, 5 }
  0x10   : > { %s893_s13 = smov (!%p275_p5, %s759_s13), 1  ;;  %s895_s19 = smov (!%p288_p6, %s285_s19), 5 }
  0x11   : > { %s834_s20 = smul.u32 6, %s893_s13  ;;  %s897_s5 = smov (!%p300_p8, %s297_s5), 5  ;;  %v416_v21 = vld [vmem:[#allocation3] sm:$0xff] }
  0x12   : > { %s278_s21 = scalar_select %p277_p7, %s755_s12, 5  ;;  %v399_v9 = vld [vmem:[#allocation2] sm:$0xff] }
  0x13   : > { %s291_s22 = sadd.s32 %s834_s20, %s895_s19  ;;  %s303_s6 = sadd.s32 %s834_s20, %s897_s5 }
  0x14   : > { %s659_s23 = sshll.u32 %s291_s22, 3  ;;  %s280_s24 = sadd.s32 %s834_s20, %s278_s21 }
  0x15   : > { %s293_s27 = scalar_lea.vmem %s879_s1, %s659_s23  ;;  %s658_s28 = sshll.u32 %s280_s24, 3 }
  0x16   : > { %v328_v1 = vld [vmem:[%s293_s27] sm:$0xff]  ;;  %s282_s4 = scalar_lea.vmem %s878_s0, %s658_s28  ;;  %s660_s7 = sshll.u32 %s303_s6, 3 }
  0x17   : > { %671 = vmatpush3.xpose.msra.mxu0 %v328_v1  ;;  %v326_v2 = vld [vmem:[%s282_s4] sm:$0xff]  ;;  %s305_s10 = scalar_lea.vmem %s880_s2, %s660_s7  ;;  %s899_s12 = smov (!%p311_p9, %s755_s12), 1 }
  0x18   : > { %v327_v3 = vmul.f32 0.5, %v326_v2  ;;  %v431_v13 = vld [vmem:[%s305_s10] sm:$0xff]  ;;  %s661_s11 = sshll.u32 %s893_s13, 1 }
  0x19   : > { %676 = vmatpush3.msra.mxu1 %v431_v13  ;;  %s314_s19 = sadd.s32 %s661_s11, %s899_s12 }
  0x1a   : > { %673 = vmatmul.mubr.f32.vlgmr.msra.gmra.mrb[0].mxu0 %v327_v3  ;;  %s662_s20 = sshll.u32 %s314_s19, 3 }
  0x1b   : > { %s316_s23 = scalar_lea.vmem %s881_s3, %s662_s20 }
  0xed   : > { %v395_v5 = vpop.f32.mrb[0].mxu0 }
  0xee   : > { %v674_v6 = vpop.f32.mrb[1].mxu0  ;;  %v401_v7 = vsel %vm400_vm2, %v395_v5, -inf }
  0xef   : > { %402 = vmax.xlane.f32.xlu0 %v401_v7 }
 0x17c   : > { %v403_v10 = vpop.xlane.xlu0 %402 }
 0x17d   : > { %v404_v11 = vmax.f32 %v399_v9, %v403_v10 }
 0x17f   : > { %v405_v12 = vsub.f32 %v399_v9, %v404_v11  ;;  %507 = vst.msk [vmem:[#allocation2] sm:$0xff] %vm322_vm1, %v404_v11  ;;  %410 = vperm.xlu0 %725, %v404_v11  }
 0x181   : > { %v406_v19 = vmul.f32 1.442695, %v405_v12 }
 0x1fe   : > { %v411_v14 = vpop.permute.xlu0 %410 }
 0x1ff   : > { %v413_v15 = vsub.f32 %v395_v5, %v411_v14 }
 0x201   : > { %v414_v16 = vmul.f32 1.442695, %v413_v15 }
 0x203   : > { %727 = vpow2.f32 %v414_v16 }
 0x204   : > { %729 = vpow2.f32 %v406_v19 }
 0x20d   : > { %v728_v17 = vpop.eup %727 }
 0x20e   : > { %678 = vmatmul.mubr.msk.f32.vlgmr.msra.gmra.mrb[0].mxu1 %vm400_vm2, %v728_v17  ;;  %v418_v18 = vsel %vm400_vm2, %v728_v17, 0.0  ;;  %v730_v20 = vpop.eup %729 }
 0x20f   : > { %419 = vadd.xlane.f32.xlu1 %v418_v18  ;;  %v417_v22 = vmul.f32 %v730_v20, %v416_v21 }
 0x220   : > { %427 = vperm.xlu1 %726, %v730_v20  }
 0x29c   : > { %v420_v23 = vpop.xlane.xlu1 %419 }
 0x29d   : > { %v421_v24 = vadd.f32 %v420_v23, %v417_v22 }
 0x29f   : > { %423 = vst.msk [vmem:[#allocation3] sm:$0xff] %vm322_vm1, %v421_v24 }
 0x2a0   : > { %v428_v29 = vpop.permute.xlu1 %427 }
 0x2a1   : > { %v430_v30 = vmul.f32 0.0, %v428_v29 }
 0x2a6   : > { %v511_v25 = vld [vmem:[#allocation3] sm:$0xff] }
 0x2a7   : > { %731 = vrcp.f32 %v511_v25 }
 0x2b1   : > { %v732_v26 = vpop.eup %731 }
 0x2b2   : > { %516 = vperm.xlu1 %726, %v732_v26  }
 0x2e1   : > { %v501_v27 = vpop.f32.mrb[0].mxu1 }
 0x2e2   : > { %v679_v28 = vpop.f32.mrb[1].mxu1  ;;  %v505_v31 = vadd.f32 %v501_v27, %v430_v30 }
 0x331   : > { %v517_v32 = vpop.permute.xlu1 %516 }
 0x332   : > { %v519_v33 = vmul.f32 %v517_v32, %v505_v31 }
 0x334   : > { %520 = vst [vmem:[%s316_s23] sm:$0xff] %v519_v33 }
 0x335 PF: > { %s13_s16 = sadd.s32 1, %s771_s16   ;;  %s882_s12 = smov %s763_s14 }
 0x336   : > { %p10_p10 = scmp.ge.s32.totalorder %s13_s16, 6   ;;  %s883_s13 = smov %s767_s15 }
 0x337   : > { %s884_s14 = smov %s887_s17  ;;  %s885_s15 = smov %s891_s18 }
 0x338   :  { %12 = sbr.rel (!%p10_p10) target bundleno = 3 (0x3), region = 76 }

// kernel: _lambda_.3
= control target key start
LH: loop header
LB: loop body
LE: loop exit
PB: predicated region body
PF: predicated region fallthrough
CT: control target
= control target key end

     0   :  { %8 = vsyncpa [#allocation4], 0  ;;  %s1367_s0 = inlined_call_operand.hbm [shape: f32[16,256], index: 0, kind: input, shape index: {}]   ;;  %s1368_s1 = inlined_call_operand.hbm [shape: f32[256,768], index: 1, kind: input, shape index: {}]   ;;  %s1369_s2 = inlined_call_operand.vmem [shape: f32[1,768], index: 2, kind: input, shape index: {}]   ;;  %s1370_s3 = inlined_call_operand.vmem [shape: f32[16,768], index: 3, kind: output, shape index: {}]  }
   0x1   :  { %9 = vsyncpa [#allocation6], 0 }
   0x2   :  { %11 = vsyncpa [#allocation6 + $0x1], 0  ;;  %s1089_s12 = smov 0   ;;  %s1091_s13 = smov 0  }
   0x3   :  { %s1093_s14 = smov 0   ;;  %s1095_s15 = smov 0  }
   0x4   :  { %s1097_s16 = smov 0   ;;  %s1099_s17 = smov 0  }
   0x5 LB: > { %s727_s18 = sadd.s32 4294967295, %s1060_s17   ;;  %s73_s19 = sadd.s32 1, %s1048_s14  ;;  %s1060_s17 = sphi %s1099_s17, %s17_s17   ;;  %s1056_s16 = sphi %s1097_s16, %s1392_s16   ;;  %s1052_s15 = sphi %s1095_s15, %s1391_s15   ;;  %s1048_s14 = sphi %s1093_s14, %s1390_s14   ;;  %s1044_s13 = sphi %s1091_s13, %s1389_s13   ;;  %s1040_s12 = sphi %s1089_s12, %s1388_s12  }
   0x6   : > { %p80_p0 = scmp.ne.s32.totalorder %s1048_s14, %s1044_s13  ;;  %p81_p1 = scmp.eq.s32.totalorder %s1060_s17, 0 }
   0x7   : > { %p86_p2 = scmp.ne.s32.totalorder %s1044_s13, %s1040_s12  ;;  %p1123_p3 = scmp.eq.s32.totalorder %s727_s18, 0 }
   0x8   : > { %p1127_p4 = por %p81_p1, %p80_p0  ;;  %p138_p5 = scmp.eq.s32.totalorder %s727_s18, 1 }
   0x9   : > { %s1376_s20 = scalar_select %p1123_p3, 1, 0 }
   0xa   : > { %p1133_p6 = por %p1123_p3, %p86_p2  ;;  %p729_p7 = scmp.ge.s32.totalorder %s1060_s17, 1 }
   0xb   : > { %p1138_p8 = por %p138_p5, %p80_p0  ;;  %p151_p9 = scmp.lt.s32.totalorder %s1060_s17, 3 }
   0xc   : > { %s1378_s22 = scalar_select %p1133_p6, 1, 0 }
   0xd   : > { %s1379_s23 = scalar_select %p1138_p8, 1, 0 }
   0xe   : > { %p1143_p10 = pnand %p729_p7, %p151_p9  ;;  %s1062_s25 = smov [#allocation3]  }
   0xf   : > { %s169_s26 = sshll.u32 %s1062_s25, 4  ;;  %p892_p12 = scmp.lt.s32.totalorder %s1060_s17, 2  ;;  %s170_s26 = int_to_ptr.vmem [resolvable:$true] %s169_s26 }
  0x10   : > { %s1380_s24 = scalar_select %p1143_p10, 1, 0 }
  0x11   : > { %p883_p11 = pneg %p1143_p10  ;;  %p1158_p0 = pnand %p892_p12, %p1127_p4 }
  0x12   : > { %s32_s29 = sadd.s32 1, %s1056_s16  ;;  %s948_s5 = scalar_lea.hbm %s1367_s0, 512 }
  0x13   : > { %p1152_p13 = pnand %p883_p11, %p1123_p3  ;;  %p949_p1 = scmp.ne.s32.totalorder %s1367_s0, %s948_s5 }
  0x14   : > { %s1382_s28 = scalar_select %p1158_p0, 1, 0 }
  0x15   : > { %p950_p2 = pneg %p1152_p13  ;;  %p955_p4 = scmp.lt.u32.totalorder %s948_s5, %s1367_s0 }
  0x17   : > { %p951_p5 = pnand %p950_p2, %p949_p1 }
  0x19   : > { %p952_p7 = pneg %p951_p5 }
  0x1b   : > { %p957_p9 = pnand %p955_p4, %p952_p7 }
  0x1d   : > { %960 = shalt.err (!%p957_p9)
}
  0x1e   : > { %s961_s10 = scalar_lea.vmem %s170_s26, 512  ;;  %p969_p6 = scmp.lt.s32.totalorder %s170_s26, %s170_s26 }
  0x1f   : > { %p962_p11 = scmp.ne.s32.totalorder %s170_s26, %s961_s10  ;;  %p970_p3 = scmp.lt.s32.totalorder %s961_s10, %s961_s10 }
  0x21   : > { %p964_p12 = pnand %p962_p11, %p950_p2  ;;  %p971_p10 = por %p970_p3, %p969_p6 }
  0x23   : > { %p965_p8 = pneg %p964_p12 }
  0x25   : > { %p972_p0 = pnand %p971_p10, %p965_p8 }
  0x27   : > { %975 = shalt.err (!%p972_p0)
}
  0x28   : > { %s1063_s11 = smov 256   ;;  %s1064_s12 = smov 16  }
  0x29   : > { %886 = dma.hbm_to_vmem [thread:$0]  (!%p1152_p13), %s1367_s0, 512, %s170_s26, [#allocation4], %s1063_s11, %s1063_s11, %s1064_s12  }
  0x2a   : > { %p34_p1 = scmp.ge.s32.totalorder %s32_s29, 2  ;;  %s183_s25 = sand.u32 1, %s1048_s14  }
  0x2b   : > { %s738_s30 = smul.u32 384, %s1056_s16  ;;  %s1197_s10 = scalar_lea.sflag [#allocation6], %s183_s25 }
  0x2c   : > { %s1394_s29 = smov (%p34_p1, %s32_s29), 0  ;;  %s874_s4 = smul.u32 768, %s183_s25 }
  0x2d   : > { %s69_s5 = ssub.s32 %s1056_s16, %s1394_s29  ;;  %s1188_s8 = scalar_lea.hbm %s1368_s1, %s738_s30 }
  0x2e   : > { %p71_p3 = scmp.eq.s32.totalorder %s69_s5, 0  ;;  %s187_s26 = scalar_lea.vmem [#allocation5], %s874_s4 }
  0x2f   : > { %s197_s27 = sshll.u32 %s187_s26, 4  ;;  %s976_s11 = scalar_lea.hbm %s1188_s8, 12288  ;;  %s1195_s27 = int_to_ptr.vmem [resolvable:$true] %s197_s27 }
  0x30   : > { %s1193_s9 = scalar_select %p71_p3, %s1048_s14, %s73_s19  }
  0x31   : > { %p977_p6 = scmp.ne.s32.totalorder %s1188_s8, %s976_s11  ;;  %p1383_p8 = scmp.ne.s32.totalorder %s1382_s28, 0 }
  0x32   : > { %s981_s21 = scalar_lea.hbm %s1368_s1, 24576  ;;  %p982_p2 = scmp.lt.u32.totalorder %s1188_s8, %s1368_s1 }
  0x33   : > { %p978_p10 = pneg %p1383_p8  ;;  %p983_p5 = scmp.lt.u32.totalorder %s981_s21, %s976_s11 }
  0x34   : > { %p985_p4 = scmp.lt.u32.totalorder %s976_s11, %s1188_s8 }
  0x35   : > { %p979_p13 = pnand %p978_p10, %p977_p6  ;;  %p984_p7 = por %p983_p5, %p982_p2 }
  0x37   : > { %p980_p0 = pneg %p979_p13  ;;  %p986_p9 = por %p985_p4, %p984_p7 }
  0x39   : > { %p987_p11 = pnand %p986_p9, %p980_p0 }
  0x3b   : > { %990 = shalt.err (!%p987_p11)
}
  0x3c   : > { %s991_s19 = scalar_lea.vmem %s1195_s27, 12288  ;;  %s1065_s25 = smov [#allocation5]  }
  0x3d   : > { %p992_p12 = scmp.ne.s32.totalorder %s1195_s27, %s991_s19  ;;  %s996_s5 = sshll.u32 %s1065_s25, 4  ;;  %s997_s5 = int_to_ptr.vmem [resolvable:$false] %s996_s5 }
  0x3e   : > { %s998_s6 = scalar_lea.vmem %s997_s5, 24576  ;;  %p999_p6 = scmp.lt.s32.totalorder %s1195_s27, %s997_s5 }
  0x3f   : > { %p994_p1 = pnand %p992_p12, %p978_p10  ;;  %p1000_p13 = scmp.lt.s32.totalorder %s998_s6, %s991_s19 }
  0x41   : > { %p995_p3 = pneg %p994_p1  ;;  %p1001_p2 = por %p1000_p13, %p999_p6 }
  0x43   : > { %p1002_p5 = pnand %p1001_p2, %p995_p3 }
  0x45   : > { %1005 = shalt.err (!%p1002_p5)
}
  0x46   : > { %s1066_s7 = smov 768   ;;  %s1067_s26 = smov 384  }
  0x47   : > { %s1068_s11 = smov 24   ;;  %p1384_p10 = scmp.ne.s32.totalorder %s1380_s24, 0 }
  0x48   : > { %890 = dma.hbm_to_vmem [thread:$0]  (!%p1383_p8), %s1188_s8, 12288, %s1195_s27, %s1197_s10, %s1066_s7, %s1067_s26, %s1068_s11  }
  0x49   : > { %217 = sbr.rel (%p1384_p10) target bundleno = 381 (0x17d), region = 32  ;;  %p1385_p0 = scmp.ne.s32.totalorder (!%p1384_p10), %s1376_s20, 0 }
  0x50   : > { %1031 = dma.done.wait (%p1385_p0), [#allocation4], 512  }
  0x51   : > { %1033 = vsyncadd (%p1385_p0), [#allocation4], 4294966784  ;;  %s1232_s12 = sand.u32 1, %s1044_s13   ;;  %p1386_p8 = scmp.ne.s32.totalorder %s1378_s22, 0 }
  0x52   : > { %s875_s18 = smul.u32 768, %s1232_s12  ;;  %s224_s21 = scalar_lea.sflag [#allocation6], %s1232_s12 }
  0x54   : > { %s1236_s30 = scalar_lea.vmem [#allocation5], %s875_s18 }
  0x55   : > { %1035 = dma.done.wait (%p1386_p8), %s224_s21, 12288  }
  0x56   : > { %1037 = vsyncadd (%p1386_p8), %s224_s21, 4294955008  ;;  %v285_v0 = vld [vmem:[%s1236_s30 + $0x8] sm:$0xff]  ;;  %v288_v1 = vld [vmem:[%s1236_s30 + $0x20] sm:$0xff]  ;;  %s257_s20 = smul.u32 3, %s1052_s15  ;;  %p1387_p4 = scmp.ne.s32.totalorder %s1379_s23, 0 }
  0x57   : > { %v284_v2 = vld [vmem:[%s1236_s30] sm:$0xff]  ;;  %v778_v3 = vpack.c.bf16 %v288_v1, %v285_v0  ;;  %v287_v4 = vld [vmem:[%s1236_s30 + $0x18] sm:$0xff]  ;;  %v294_v6 = vld [vmem:[%s1236_s30 + $0x50] sm:$0xff]  ;;  %s876_s8 = smul.u32 48, %s1232_s12 }
  0x58   : > { %v291_v5 = vld [vmem:[%s1236_s30 + $0x38] sm:$0xff]  ;;  %v780_v7 = vpack.c.bf16 %v287_v4, %v284_v2  ;;  %v290_v9 = vld [vmem:[%s1236_s30 + $0x30] sm:$0xff]  ;;  %v293_v10 = vld [vmem:[%s1236_s30 + $0x48] sm:$0xff]  ;;  %p258_p7 = scmp.lt.s32.totalorder %s257_s20, 5  ;;  %s739_s10 = smul.u32 (%p1387_p4), 24, %s1052_s15 }
  0x59   : > { %v782_v8 = vpack.c.bf16 %v294_v6, %v291_v5  ;;  %v297_v11 = vld [vmem:[%s1236_s30 + $0x68] sm:$0xff]  ;;  %779 = vmatprep.subr.bf16.mxu0 %v778_v3  ;;  %v300_v12 = vld [vmem:[%s1236_s30 + $0x80] sm:$0xff]  ;;  %v784_v13 = vpack.c.bf16 %v293_v10, %v290_v9  ;;  %v299_v16 = vld [vmem:[%s1236_s30 + $0x78] sm:$0xff]  ;;  %s252_s27 = scalar_lea.vmem [#allocation7], %s876_s8 }
  0x5a   : > { %781 = vmatpush1.bf16.msra.mxu0 %v780_v7  ;;  %v786_v14 = vpack.c.bf16 %v300_v12, %v297_v11  ;;  %v296_v15 = vld [vmem:[%s1236_s30 + $0x60] sm:$0xff]  ;;  %v303_v17 = vld [vmem:[%s1236_s30 + $0x98] sm:$0xff]  ;;  %v306_v18 = vld [vmem:[%s1236_s30 + $0xb0] sm:$0xff]  ;;  %s1396_s20 = smov (!%p258_p7, %s257_s20), 5  ;;  %s594_s25 = scalar_lea.vmem (%p1387_p4), %s1370_s3, %s739_s10 }
  0x5b   : > { %783 = vmatprep.subr.bf16.mxu0 %v782_v8  ;;  %v788_v19 = vpack.c.bf16 %v299_v16, %v296_v15  ;;  %v790_v20 = vpack.c.bf16 %v306_v18, %v303_v17  ;;  %v302_v21 = vld [vmem:[%s1236_s30 + $0x90] sm:$0xff]  ;;  %v305_v22 = vld [vmem:[%s1236_s30 + $0xa8] sm:$0xff]  ;;  %v312_v24 = vld [vmem:[%s1236_s30 + $0xe0] sm:$0xff]  ;;  %s260_s28 = scalar_lea.vmem %s1369_s2, %s1396_s20 }
  0x5c   : > { %v309_v23 = vld [vmem:[%s1236_s30 + $0xc8] sm:$0xff]  ;;  %v334_v25 = vld [vmem:[%s1236_s30 + $0x190] sm:$0xff]  ;;  %v792_v29 = vpack.c.bf16 %v305_v22, %v302_v21  ;;  %v308_v30 = vld [vmem:[%s1236_s30 + $0xc0] sm:$0xff] }
  0x5d   : > { %v337_v26 = vld [vmem:[%s1236_s30 + $0x1a8] sm:$0xff]  ;;  %v286_v27 = vld [vmem:[%s1236_s30 + $0x10] sm:$0xff]  ;;  %v311_v31 = vld [vmem:[%s1236_s30 + $0xd8] sm:$0xff]  ;;  %v794_v34 = vpack.c.bf16 %v312_v24, %v309_v23 }
  0x5e   : > { %785 = vmatpush1.bf16.msra.mxu0 %v784_v13  ;;  %v289_v28 = vld [vmem:[%s1236_s30 + $0x28] sm:$0xff]  ;;  %v842_v32 = vpack.c.bf16 %v337_v26, %v334_v25  ;;  %v315_v35 = vld [vmem:[%s1236_s30 + $0xf8] sm:$0xff]  ;;  %v340_v36 = vld [vmem:[%s1236_s30 + $0x1c0] sm:$0xff]  ;;  %v796_v43 = vpack.c.bf16 %v311_v31, %v308_v30 }
  0x5f   : > { %787 = vmatprep.subr.bf16.mxu0 %v786_v14  ;;  %v844_v33 = vpack.c.bf16 %v289_v28, %v286_v27  ;;  %v343_v37 = vld [vmem:[%s1236_s30 + $0x1d8] sm:$0xff]  ;;  %v318_v38 = vld [vmem:[%s1236_s30 + $0x110] sm:$0xff]  ;;  %v292_v40 = vld [vmem:[%s1236_s30 + $0x40] sm:$0xff] }
  0x60   : > { %843 = vmatprep.subr.bf16.mxu1 %v842_v32  ;;  %v846_v39 = vpack.c.bf16 %v343_v37, %v340_v36  ;;  %v295_v41 = vld [vmem:[%s1236_s30 + $0x58] sm:$0xff]  ;;  %v346_v44 = vld [vmem:[%s1236_s30 + $0x1f0] sm:$0xff]  ;;  %v349_v45 = vld [vmem:[%s1236_s30 + $0x208] sm:$0xff]  ;;  %v798_v47 = vpack.c.bf16 %v318_v38, %v315_v35 }
  0x61   : > { %845 = vmatpush3.bf16.msra.mxu1 %v844_v33  ;;  %v848_v42 = vpack.c.bf16 %v295_v41, %v292_v40  ;;  %v298_v46 = vld [vmem:[%s1236_s30 + $0x70] sm:$0xff]  ;;  %v317_v49 = vld [vmem:[%s1236_s30 + $0x108] sm:$0xff]  ;;  %v850_v50 = vpack.c.bf16 %v349_v45, %v346_v44  ;;  %v324_v53 = vld [vmem:[%s1236_s30 + $0x140] sm:$0xff] }
  0x62   : > { %789 = vmatpush1.bf16.msra.mxu0 %v788_v19  ;;  %847 = vmatprep.subr.bf16.mxu1 %v846_v39  ;;  %v314_v48 = vld [vmem:[%s1236_s30 + $0xf0] sm:$0xff]  ;;  %v301_v51 = vld [vmem:[%s1236_s30 + $0x88] sm:$0xff]  ;;  %v352_v54 = vld [vmem:[%s1236_s30 + $0x220] sm:$0xff] }
  0x63   : > { %791 = vmatprep.subr.bf16.mxu0 %v790_v20  ;;  %v321_v52 = vld [vmem:[%s1236_s30 + $0x128] sm:$0xff]  ;;  %v852_v55 = vpack.c.bf16 %v301_v51, %v298_v46  ;;  %v355_v56 = vld [vmem:[%s1236_s30 + $0x238] sm:$0xff]  ;;  %v800_v57 = vpack.c.bf16 %v317_v49, %v314_v48  ;;  %v320_v58 = vld [vmem:[%s1236_s30 + $0x120] sm:$0xff] }
  0x64   : > { %v854_v59 = vpack.c.bf16 %v355_v56, %v352_v54  ;;  %v304_v60 = vld [vmem:[%s1236_s30 + $0xa0] sm:$0xff]  ;;  %v307_v61 = vld [vmem:[%s1236_s30 + $0xb8] sm:$0xff]  ;;  %v802_v62 = vpack.c.bf16 %v324_v53, %v321_v52  ;;  %v358_v0 = vld [vmem:[%s1236_s30 + $0x250] sm:$0xff] }
  0x65   : > { %849 = vmatpush3.bf16.msra.mxu1 %v848_v42  ;;  %v323_v63 = vld [vmem:[%s1236_s30 + $0x138] sm:$0xff]  ;;  %v361_v1 = vld [vmem:[%s1236_s30 + $0x268] sm:$0xff]  ;;  %v330_v3 = vld [vmem:[%s1236_s30 + $0x170] sm:$0xff]  ;;  %v856_v4 = vpack.c.bf16 %v307_v61, %v304_v60 }
  0x66   : > { %793 = vmatpush1.bf16.msra.mxu0 %v792_v29  ;;  %851 = vmatprep.subr.bf16.mxu1 %v850_v50  ;;  %v327_v2 = vld [vmem:[%s1236_s30 + $0x158] sm:$0xff]  ;;  %v804_v5 = vpack.c.bf16 %v323_v63, %v320_v58  ;;  %v326_v6 = vld [vmem:[%s1236_s30 + $0x150] sm:$0xff]  ;;  %v858_v7 = vpack.c.bf16 %v361_v1, %v358_v0  ;;  %v313_v9 = vld [vmem:[%s1236_s30 + $0xe8] sm:$0xff] }
  0x67   : > { %795 = vmatprep.subr.bf16.mxu0 %v794_v34  ;;  %v310_v8 = vld [vmem:[%s1236_s30 + $0xd0] sm:$0xff]  ;;  %v806_v10 = vpack.c.bf16 %v330_v3, %v327_v2  ;;  %v329_v11 = vld [vmem:[%s1236_s30 + $0x168] sm:$0xff]  ;;  %v364_v12 = vld [vmem:[%s1236_s30 + $0x280] sm:$0xff] }
  0x68   : > { %v367_v13 = vld [vmem:[%s1236_s30 + $0x298] sm:$0xff]  ;;  %v333_v14 = vld [vmem:[%s1236_s30 + $0x188] sm:$0xff]  ;;  %v336_v15 = vld [vmem:[%s1236_s30 + $0x1a0] sm:$0xff]  ;;  %v860_v16 = vpack.c.bf16 %v313_v9, %v310_v8  ;;  %v808_v17 = vpack.c.bf16 %v329_v11, %v326_v6 }
  0x69   : > { %853 = vmatpush3.bf16.msra.mxu1 %v852_v55  ;;  %v332_v18 = vld [vmem:[%s1236_s30 + $0x180] sm:$0xff]  ;;  %v862_v19 = vpack.c.bf16 %v367_v13, %v364_v12  ;;  %v319_v21 = vld [vmem:[%s1236_s30 + $0x118] sm:$0xff]  ;;  %v810_v22 = vpack.c.bf16 %v336_v15, %v333_v14  ;;  %v370_v24 = vld [vmem:[%s1236_s30 + $0x2b0] sm:$0xff] }
  0x6a   : > { %797 = vmatpush1.bf16.msra.mxu0 %v796_v43  ;;  %855 = vmatprep.subr.bf16.mxu1 %v854_v59  ;;  %v316_v20 = vld [vmem:[%s1236_s30 + $0x100] sm:$0xff]  ;;  %v335_v23 = vld [vmem:[%s1236_s30 + $0x198] sm:$0xff]  ;;  %v373_v25 = vld [vmem:[%s1236_s30 + $0x2c8] sm:$0xff] }
  0x6b   : > { %799 = vmatprep.subr.bf16.mxu0 %v798_v47  ;;  %v339_v26 = vld [vmem:[%s1236_s30 + $0x1b8] sm:$0xff]  ;;  %v342_v27 = vld [vmem:[%s1236_s30 + $0x1d0] sm:$0xff]  ;;  %v864_v28 = vpack.c.bf16 %v319_v21, %v316_v20  ;;  %v275_v29 = vld [vmem:[#allocation3 + $0x8] sm:$0xff]  ;;  %v812_v30 = vpack.c.bf16 %v335_v23, %v332_v18  ;;  %v866_v32 = vpack.c.bf16 %v373_v25, %v370_v24  ;;  %v555_v20 = vlaneseq }
  0x6c   : > { %v338_v31 = vld [vmem:[%s1236_s30 + $0x1b0] sm:$0xff]  ;;  %v325_v34 = vld [vmem:[%s1236_s30 + $0x148] sm:$0xff]  ;;  %v814_v35 = vpack.c.bf16 %v342_v27, %v339_v26  ;;  %v376_v37 = vld [vmem:[%s1236_s30 + $0x2e0] sm:$0xff]  ;;  %521 = vmatprep.mubr.f32.mxu1 %v275_v29  ;;  %444 = vmatprep.mubr.f32.mxu0 %v275_v29 }
  0x6d   : > { %857 = vmatpush3.bf16.msra.mxu1 %v856_v4  ;;  %v322_v33 = vld [vmem:[%s1236_s30 + $0x130] sm:$0xff]  ;;  %v341_v36 = vld [vmem:[%s1236_s30 + $0x1c8] sm:$0xff]  ;;  %v379_v38 = vld [vmem:[%s1236_s30 + $0x2f8] sm:$0xff]  ;;  %v556_v21 = vshrl.u32 %v555_v20, 7 }
  0x6e   : > { %801 = vmatpush1.bf16.msra.mxu0 %v800_v57  ;;  %859 = vmatprep.subr.bf16.mxu1 %v858_v7  ;;  %v345_v39 = vld [vmem:[%s1236_s30 + $0x1e8] sm:$0xff]  ;;  %v348_v40 = vld [vmem:[%s1236_s30 + $0x200] sm:$0xff]  ;;  %v868_v41 = vpack.c.bf16 %v325_v34, %v322_v33  ;;  %v816_v42 = vpack.c.bf16 %v341_v36, %v338_v31  ;;  %v870_v43 = vpack.c.bf16 %v379_v38, %v376_v37  ;;  %v331_v45 = vld [vmem:[%s1236_s30 + $0x178] sm:$0xff] }
  0x6f   : > { %803 = vmatprep.subr.bf16.mxu0 %v802_v62  ;;  %v328_v44 = vld [vmem:[%s1236_s30 + $0x160] sm:$0xff]  ;;  %v818_v46 = vpack.c.bf16 %v348_v40, %v345_v39  ;;  %v347_v48 = vld [vmem:[%s1236_s30 + $0x1f8] sm:$0xff]  ;;  %v354_v50 = vld [vmem:[%s1236_s30 + $0x230] sm:$0xff]  ;;  %v557_v33 = vsub.s32 0, %v556_v21  ;;  %v561_v34 = vsub.s32 1, %v556_v21 }
  0x70   : > { %v344_v47 = vld [vmem:[%s1236_s30 + $0x1e0] sm:$0xff]  ;;  %v351_v49 = vld [vmem:[%s1236_s30 + $0x218] sm:$0xff]  ;;  %v872_v51 = vpack.c.bf16 %v331_v45, %v328_v44  ;;  %v350_v54 = vld [vmem:[%s1236_s30 + $0x210] sm:$0xff] }
  0x71   : > { %861 = vmatpush3.bf16.msra.mxu1 %v860_v16  ;;  %v820_v52 = vpack.c.bf16 %v347_v48, %v344_v47  ;;  %v822_v53 = vpack.c.bf16 %v354_v50, %v351_v49  ;;  %v353_v55 = vld [vmem:[%s1236_s30 + $0x228] sm:$0xff]  ;;  %v360_v57 = vld [vmem:[%s1236_s30 + $0x260] sm:$0xff]  ;;  %v277_v60 = vld [vmem:[#allocation3 + $0x18] sm:$0xff] }
  0x72   : > { %805 = vmatpush1.bf16.msra.mxu0 %v804_v5  ;;  %863 = vmatprep.subr.bf16.mxu1 %v862_v19  ;;  %v357_v56 = vld [vmem:[%s1236_s30 + $0x248] sm:$0xff]  ;;  %v274_v58 = vld [vmem:[#allocation3] sm:$0xff]  ;;  %v824_v59 = vpack.c.bf16 %v353_v55, %v350_v54  ;;  %v359_v63 = vld [vmem:[%s1236_s30 + $0x258] sm:$0xff] }
  0x73   : > { %807 = vmatprep.subr.bf16.mxu0 %v806_v10  ;;  %v826_v61 = vpack.c.bf16 %v360_v57, %v357_v56  ;;  %v356_v62 = vld [vmem:[%s1236_s30 + $0x240] sm:$0xff]  ;;  %v363_v0 = vld [vmem:[%s1236_s30 + $0x278] sm:$0xff]  ;;  %v366_v1 = vld [vmem:[%s1236_s30 + $0x290] sm:$0xff] }
  0x74   : > { %v276_v2 = vld [vmem:[#allocation3 + $0x10] sm:$0xff]  ;;  %v828_v3 = vpack.c.bf16 %v359_v63, %v356_v62  ;;  %v830_v4 = vpack.c.bf16 %v366_v1, %v363_v0  ;;  %v365_v6 = vld [vmem:[%s1236_s30 + $0x288] sm:$0xff]  ;;  %v372_v8 = vld [vmem:[%s1236_s30 + $0x2c0] sm:$0xff] }
  0x75   : > { %865 = vmatpush3.bf16.msra.mxu1 %v864_v28  ;;  %v362_v5 = vld [vmem:[%s1236_s30 + $0x270] sm:$0xff]  ;;  %v369_v7 = vld [vmem:[%s1236_s30 + $0x2a8] sm:$0xff]  ;;  %v368_v11 = vld [vmem:[%s1236_s30 + $0x2a0] sm:$0xff] }
  0x76   : > { %809 = vmatpush1.bf16.msra.mxu0 %v808_v17  ;;  %867 = vmatprep.subr.bf16.mxu1 %v866_v32  ;;  %v832_v9 = vpack.c.bf16 %v365_v6, %v362_v5  ;;  %v834_v10 = vpack.c.bf16 %v372_v8, %v369_v7  ;;  %v371_v12 = vld [vmem:[%s1236_s30 + $0x2b8] sm:$0xff]  ;;  %v378_v14 = vld [vmem:[%s1236_s30 + $0x2f0] sm:$0xff]  ;;  %v377_v18 = vld [vmem:[%s1236_s30 + $0x2e8] sm:$0xff] }
  0x77   : > { %811 = vmatprep.subr.bf16.mxu0 %v810_v22  ;;  %v375_v13 = vld [vmem:[%s1236_s30 + $0x2d8] sm:$0xff]  ;;  %v836_v15 = vpack.c.bf16 %v371_v12, %v368_v11  ;;  %v374_v17 = vld [vmem:[%s1236_s30 + $0x2d0] sm:$0xff]  ;;  %v565_v22 = vsub.s32 2, %v556_v21  ;;  %v553_v23 = vld [vmem:[%s260_s28] sm:$0x7] }
  0x78   : > { %v838_v16 = vpack.c.bf16 %v378_v14, %v375_v13  ;;  %v840_v19 = vpack.c.bf16 %v377_v18, %v374_v17  ;;  %v562_v36 = vrot.slane %v553_v23, %v561_v34 }
  0x79   : > { %869 = vmatpush3.bf16.msra.mxu1 %v868_v41  ;;  %v566_v25 = vrot.slane %v553_v23, %v565_v22 }
  0x7a   : > { %813 = vmatpush1.bf16.msra.mxu0 %v812_v30  ;;  %871 = vmatprep.subr.bf16.mxu1 %v870_v43 }
  0x7b   : > { %815 = vmatprep.subr.bf16.mxu0 %v814_v35  ;;  %v558_v35 = vrot.slane %v553_v23, %v557_v33 }
  0x7d   : > { %873 = vmatpush3.bf16.msra.mxu1 %v872_v51 }
  0x7e   : > { %817 = vmatpush1.bf16.msra.mxu0 %v816_v42 }
  0x7f   : > { %819 = vmatprep.subr.bf16.mxu0 %v818_v46 }
  0x80   : > { %522 = vmatmul.mubr.f32.vlgmr.msra.gmra.mrb[0].mxu1 %v274_v58 }
  0x81   : > { %526 = vmatprep.mubr.f32.mxu1 %v277_v60 }
  0x82   : > { %821 = vmatpush1.bf16.msra.mxu0 %v820_v52 }
  0x83   : > { %823 = vmatprep.subr.bf16.mxu0 %v822_v53 }
  0x84   : > { %527 = vmatmul.mubr.f32.gmra.mrb[2].mxu1 %v276_v2 }
  0x86   : > { %825 = vmatpush1.bf16.msra.mxu0 %v824_v59 }
  0x87   : > { %827 = vmatprep.subr.bf16.mxu0 %v826_v61 }
  0x8a   : > { %829 = vmatpush1.bf16.msra.mxu0 %v828_v3 }
  0x8b   : > { %831 = vmatprep.subr.bf16.mxu0 %v830_v4 }
  0x8e   : > { %833 = vmatpush1.bf16.msra.mxu0 %v832_v9 }
  0x8f   : > { %835 = vmatprep.subr.bf16.mxu0 %v834_v10 }
  0x92   : > { %837 = vmatpush1.bf16.msra.mxu0 %v836_v15 }
  0x93   : > { %839 = vmatprep.subr.bf16.mxu0 %v838_v16 }
  0x96   : > { %841 = vmatpush1.bf16.msra.mxu0 %v840_v19 }
  0x99   : > { %445 = vmatmul.mubr.f32.vlgmr.msra.gmra.mrb[0].mxu0 %v274_v58 }
  0x9a   : > { %450 = vmatprep.mubr.f32.mxu0 %v277_v60 }
  0x9d   : > { %451 = vmatmul.mubr.f32.gmra.mrb[2].mxu0 %v276_v2 }
 0x153   : > { %v772_v24 = vpop.f32.mrb[0].mxu1 }
 0x154   : > { %v773_v26 = vpop.f32.mrb[1].mxu1 }
 0x155   : > { %v774_v27 = vadd.f32 %v773_v26, %v772_v24 }
 0x157   : > { %v572_v28 = vadd.f32 %v774_v27, %v566_v25  ;;  %v775_v29 = vpop.f32.mrb[2].mxu1 }
 0x158   : > { %v776_v30 = vpop.f32.mrb[3].mxu1 }
 0x159   : > { %578 = vst [vmem:[%s252_s27 + $0x10] sm:$0xff] %v572_v28  ;;  %v777_v31 = vadd.f32 %v776_v30, %v775_v29 }
 0x15b   : > { %v575_v32 = vadd.f32 %v777_v31, %v566_v25 }
 0x15d   : > { %581 = vst [vmem:[%s252_s27 + $0x28] sm:$0xff] %v575_v32 }
 0x160   : > { %v611_v47 = vld [vmem:[%s252_s27 + $0x10] sm:$0xff] (%p1387_p4) }
 0x161   : > { %612 = vst [vmem:[%s594_s25 + $0x10] sm:$0xff] (%p1387_p4), %v611_v47 }
 0x164   : > { %v617_v50 = vld [vmem:[%s252_s27 + $0x28] sm:$0xff] (%p1387_p4) }
 0x165   : > { %618 = vst [vmem:[%s594_s25 + $0x40] sm:$0xff] (%p1387_p4), %v617_v50 }
 0x16c   : > { %v446_v37 = vpop.f32.mrb[0].mxu0 }
 0x16d   : > { %v570_v38 = vadd.f32 %v558_v35, %v446_v37  ;;  %v448_v39 = vpop.f32.mrb[1].mxu0 }
 0x16e   : > { %v571_v40 = vadd.f32 %v562_v36, %v448_v39  ;;  %588 = sbr.rel (!%p1387_p4) target bundleno = 381 (0x17d), region = 52 }
 0x16f   : > { %576 = vst [vmem:[%s252_s27] sm:$0xff] %v570_v38 }
 0x170   : > { %577 = vst [vmem:[%s252_s27 + $0x8] sm:$0xff] %v571_v40  ;;  %v452_v41 = vpop.f32.mrb[2].mxu0 }
 0x171   : > { %v573_v42 = vadd.f32 %v558_v35, %v452_v41  ;;  %v454_v43 = vpop.f32.mrb[3].mxu0 }
 0x172   : > { %v574_v44 = vadd.f32 %v562_v36, %v454_v43 }
 0x173   : > { %579 = vst [vmem:[%s252_s27 + $0x18] sm:$0xff] %v573_v42 }
 0x174   : > { %580 = vst [vmem:[%s252_s27 + $0x20] sm:$0xff] %v574_v44 }
 0x176   : > { %v607_v45 = vld [vmem:[%s252_s27] sm:$0xff] }
 0x177   : > { %v609_v46 = vld [vmem:[%s252_s27 + $0x8] sm:$0xff]  ;;  %608 = vst [vmem:[%s594_s25] sm:$0xff] %v607_v45 }
 0x178   : > { %610 = vst [vmem:[%s594_s25 + $0x8] sm:$0xff] %v609_v46 }
 0x17a   : > { %v613_v48 = vld [vmem:[%s252_s27 + $0x18] sm:$0xff] }
 0x17b   : > { %v615_v49 = vld [vmem:[%s252_s27 + $0x20] sm:$0xff]  ;;  %614 = vst [vmem:[%s594_s25 + $0x30] sm:$0xff] %v613_v48 }
 0x17c   : > { %616 = vst [vmem:[%s594_s25 + $0x38] sm:$0xff] %v615_v49 }
 0x17d PF: > { %s17_s17 = sadd.s32 1, %s1060_s17   ;;  %s1388_s12 = smov %s1044_s13 }
 0x17e   : > { %p14_p9 = scmp.ge.s32.totalorder %s17_s17, 4   ;;  %s1389_s13 = smov %s1048_s14 }
 0x17f   : > { %s1390_s14 = smov %s1193_s9  ;;  %s1391_s15 = smov %s1056_s16 }
 0x180   : > { %s1392_s16 = smov %s1394_s29  ;;  %16 = sbr.rel (!%p14_p9) target bundleno = 5 (0x5), region = 112 }
 0x187   :  { %634 = vsyncpa [#allocation4], 1 }
 0x188   :  { %636 = vsyncpa [#allocation4 + $0x1], 1 }
 0x189   :  { %637 = vsyncpa [#allocation6], 1 }
 0x18a   :  { %639 = vsyncpa [#allocation6 + $0x1], 1 }

// kernel: _lambda_.5
= control target key start
LH: loop header
LB: loop body
LE: loop exit
PB: predicated region body
PF: predicated region fallthrough
CT: control target
= control target key end

     0   :  { %s588_s0 = inlined_call_operand.vmem [shape: f32[16,256], index: 0, kind: input, shape index: {}]   ;;  %s589_s1 = inlined_call_operand.vmem [shape: f32[256,256], index: 1, kind: input, shape index: {}]   ;;  %s590_s2 = inlined_call_operand.vmem [shape: f32[1,256], index: 2, kind: input, shape index: {}]   ;;  %s591_s3 = inlined_call_operand.hbm [shape: f32[16,256], index: 3, kind: output, shape index: {}]  }
   0x1   :  { %v32_v0 = vld [vmem:[%s589_s1 + $0x8] sm:$0xff]  ;;  %v34_v1 = vld [vmem:[%s589_s1 + $0x18] sm:$0xff]  ;;  %v31_v2 = vld [vmem:[%s589_s1] sm:$0xff] }
   0x2   :  { %v223_v3 = vpack.c.bf16 %v34_v1, %v32_v0  ;;  %v33_v4 = vld [vmem:[%s589_s1 + $0x10] sm:$0xff]  ;;  %v36_v5 = vld [vmem:[%s589_s1 + $0x28] sm:$0xff]  ;;  %v38_v6 = vld [vmem:[%s589_s1 + $0x38] sm:$0xff] }
   0x3   :  { %v225_v7 = vpack.c.bf16 %v33_v4, %v31_v2  ;;  %v227_v8 = vpack.c.bf16 %v38_v6, %v36_v5  ;;  %v35_v9 = vld [vmem:[%s589_s1 + $0x20] sm:$0xff]  ;;  %v37_v10 = vld [vmem:[%s589_s1 + $0x30] sm:$0xff]  ;;  %v40_v11 = vld [vmem:[%s589_s1 + $0x48] sm:$0xff] }
   0x4   :  { %224 = vmatprep.subr.bf16.mxu0 %v223_v3  ;;  %287 = vmatprep.subr.bf16.mxu1 %v223_v3  ;;  %v42_v12 = vld [vmem:[%s589_s1 + $0x58] sm:$0xff]  ;;  %v229_v13 = vpack.c.bf16 %v37_v10, %v35_v9  ;;  %v39_v15 = vld [vmem:[%s589_s1 + $0x40] sm:$0xff]  ;;  %v41_v16 = vld [vmem:[%s589_s1 + $0x50] sm:$0xff] }
   0x5   :  { %226 = vmatpush1.bf16.msra.mxu0 %v225_v7  ;;  %303 = vmatpush1.bf16.msra.mxu1 %v225_v7  ;;  %v231_v14 = vpack.c.bf16 %v42_v12, %v40_v11  ;;  %v44_v17 = vld [vmem:[%s589_s1 + $0x68] sm:$0xff]  ;;  %v46_v18 = vld [vmem:[%s589_s1 + $0x78] sm:$0xff]  ;;  %v233_v19 = vpack.c.bf16 %v41_v16, %v39_v15  ;;  %v43_v21 = vld [vmem:[%s589_s1 + $0x60] sm:$0xff] }
   0x6   :  { %228 = vmatprep.subr.bf16.mxu0 %v227_v8  ;;  %288 = vmatprep.subr.bf16.mxu1 %v227_v8  ;;  %v235_v20 = vpack.c.bf16 %v46_v18, %v44_v17  ;;  %v45_v22 = vld [vmem:[%s589_s1 + $0x70] sm:$0xff]  ;;  %v48_v23 = vld [vmem:[%s589_s1 + $0x88] sm:$0xff]  ;;  %v50_v24 = vld [vmem:[%s589_s1 + $0x98] sm:$0xff] }
   0x7   :  { %v237_v25 = vpack.c.bf16 %v45_v22, %v43_v21  ;;  %v239_v26 = vpack.c.bf16 %v50_v24, %v48_v23  ;;  %v47_v27 = vld [vmem:[%s589_s1 + $0x80] sm:$0xff]  ;;  %v49_v28 = vld [vmem:[%s589_s1 + $0x90] sm:$0xff]  ;;  %v52_v29 = vld [vmem:[%s589_s1 + $0xa8] sm:$0xff] }
   0x8   :  { %v54_v30 = vld [vmem:[%s589_s1 + $0xb8] sm:$0xff]  ;;  %v241_v31 = vpack.c.bf16 %v49_v28, %v47_v27  ;;  %v51_v33 = vld [vmem:[%s589_s1 + $0xa0] sm:$0xff]  ;;  %v53_v34 = vld [vmem:[%s589_s1 + $0xb0] sm:$0xff] }
   0x9   :  { %230 = vmatpush1.bf16.msra.mxu0 %v229_v13  ;;  %304 = vmatpush1.bf16.msra.mxu1 %v229_v13  ;;  %v243_v32 = vpack.c.bf16 %v54_v30, %v52_v29  ;;  %v56_v35 = vld [vmem:[%s589_s1 + $0xc8] sm:$0xff]  ;;  %v58_v36 = vld [vmem:[%s589_s1 + $0xd8] sm:$0xff]  ;;  %v245_v37 = vpack.c.bf16 %v53_v34, %v51_v33  ;;  %v55_v38 = vld [vmem:[%s589_s1 + $0xc0] sm:$0xff] }
   0xa   :  { %232 = vmatprep.subr.bf16.mxu0 %v231_v14  ;;  %289 = vmatprep.subr.bf16.mxu1 %v231_v14  ;;  %v247_v39 = vpack.c.bf16 %v58_v36, %v56_v35  ;;  %v57_v40 = vld [vmem:[%s589_s1 + $0xd0] sm:$0xff]  ;;  %v24_v41 = vld [vmem:[%s588_s0 + $0x8] sm:$0xff]  ;;  %v26_v42 = vld [vmem:[%s588_s0 + $0x18] sm:$0xff] }
   0xb   :  { %v60_v43 = vld [vmem:[%s589_s1 + $0xe8] sm:$0xff]  ;;  %v62_v44 = vld [vmem:[%s589_s1 + $0xf8] sm:$0xff]  ;;  %159 = vmatprep.mubr.f32.mxu0 %v24_v41  ;;  %165 = vmatprep.mubr.f32.mxu1 %v26_v42 }
   0xd   :  { %234 = vmatpush1.bf16.msra.mxu0 %v233_v19  ;;  %305 = vmatpush1.bf16.msra.mxu1 %v233_v19 }
   0xe   :  { %236 = vmatprep.subr.bf16.mxu0 %v235_v20  ;;  %290 = vmatprep.subr.bf16.mxu1 %v235_v20 }
  0x11   :  { %238 = vmatpush1.bf16.msra.mxu0 %v237_v25  ;;  %306 = vmatpush1.bf16.msra.mxu1 %v237_v25 }
  0x12   :  { %240 = vmatprep.subr.bf16.mxu0 %v239_v26  ;;  %291 = vmatprep.subr.bf16.mxu1 %v239_v26 }
  0x15   :  { %242 = vmatpush1.bf16.msra.mxu0 %v241_v31  ;;  %307 = vmatpush1.bf16.msra.mxu1 %v241_v31 }
  0x16   :  { %244 = vmatprep.subr.bf16.mxu0 %v243_v32  ;;  %292 = vmatprep.subr.bf16.mxu1 %v243_v32 }
  0x17   :  { %8 = vsyncpa [#allocation4], 0  ;;  %v249_v45 = vpack.c.bf16 %v57_v40, %v55_v38  ;;  %v251_v46 = vpack.c.bf16 %v62_v44, %v60_v43  ;;  %v59_v47 = vld [vmem:[%s589_s1 + $0xe0] sm:$0xff]  ;;  %v61_v48 = vld [vmem:[%s589_s1 + $0xf0] sm:$0xff]  ;;  %v189_v36 = vlaneseq  ;;  %s346_s14 = smov [#allocation3]  }
  0x18   :  { %v64_v49 = vld [vmem:[%s589_s1 + $0x108] sm:$0xff]  ;;  %v66_v50 = vld [vmem:[%s589_s1 + $0x118] sm:$0xff]  ;;  %v253_v51 = vpack.c.bf16 %v61_v48, %v59_v47  ;;  %v63_v53 = vld [vmem:[%s589_s1 + $0x100] sm:$0xff]  ;;  %s212_s15 = sshll.u32 %s346_s14, 4  ;;  %s213_s15 = int_to_ptr.vmem [resolvable:$true] %s212_s15 }
  0x19   :  { %246 = vmatpush1.bf16.msra.mxu0 %v245_v37  ;;  %308 = vmatpush1.bf16.msra.mxu1 %v245_v37  ;;  %v255_v52 = vpack.c.bf16 %v66_v50, %v64_v49  ;;  %v65_v54 = vld [vmem:[%s589_s1 + $0x110] sm:$0xff]  ;;  %v68_v55 = vld [vmem:[%s589_s1 + $0x128] sm:$0xff]  ;;  %v70_v56 = vld [vmem:[%s589_s1 + $0x138] sm:$0xff]  ;;  %v190_v37 = vshrl.u32 %v189_v36, 7  ;;  %p327_p1 = scmp.lt.s32.totalorder %s213_s15, %s213_s15 }
  0x1a   :  { %248 = vmatprep.subr.bf16.mxu0 %v247_v39  ;;  %293 = vmatprep.subr.bf16.mxu1 %v247_v39  ;;  %v257_v57 = vpack.c.bf16 %v65_v54, %v63_v53  ;;  %v259_v58 = vpack.c.bf16 %v70_v56, %v68_v55  ;;  %v67_v59 = vld [vmem:[%s589_s1 + $0x120] sm:$0xff]  ;;  %v69_v60 = vld [vmem:[%s589_s1 + $0x130] sm:$0xff]  ;;  %v72_v61 = vld [vmem:[%s589_s1 + $0x148] sm:$0xff] }
  0x1b   :  { %v74_v62 = vld [vmem:[%s589_s1 + $0x158] sm:$0xff]  ;;  %v261_v63 = vpack.c.bf16 %v69_v60, %v67_v59  ;;  %v71_v1 = vld [vmem:[%s589_s1 + $0x140] sm:$0xff]  ;;  %v73_v2 = vld [vmem:[%s589_s1 + $0x150] sm:$0xff]  ;;  %v191_v38 = vsub.s32 0, %v190_v37  ;;  %v195_v40 = vsub.s32 1, %v190_v37 }
  0x1c   :  { %v263_v0 = vpack.c.bf16 %v74_v62, %v72_v61  ;;  %v76_v3 = vld [vmem:[%s589_s1 + $0x168] sm:$0xff]  ;;  %v78_v4 = vld [vmem:[%s589_s1 + $0x178] sm:$0xff]  ;;  %v265_v5 = vpack.c.bf16 %v73_v2, %v71_v1  ;;  %v75_v7 = vld [vmem:[%s589_s1 + $0x160] sm:$0xff] }
  0x1d   :  { %250 = vmatpush1.bf16.msra.mxu0 %v249_v45  ;;  %309 = vmatpush1.bf16.msra.mxu1 %v249_v45  ;;  %v267_v6 = vpack.c.bf16 %v78_v4, %v76_v3  ;;  %v77_v8 = vld [vmem:[%s589_s1 + $0x170] sm:$0xff]  ;;  %v80_v9 = vld [vmem:[%s589_s1 + $0x188] sm:$0xff]  ;;  %v82_v10 = vld [vmem:[%s589_s1 + $0x198] sm:$0xff] }
  0x1e   :  { %252 = vmatprep.subr.bf16.mxu0 %v251_v46  ;;  %294 = vmatprep.subr.bf16.mxu1 %v251_v46  ;;  %v269_v11 = vpack.c.bf16 %v77_v8, %v75_v7  ;;  %v271_v12 = vpack.c.bf16 %v82_v10, %v80_v9  ;;  %v79_v13 = vld [vmem:[%s589_s1 + $0x180] sm:$0xff]  ;;  %v81_v14 = vld [vmem:[%s589_s1 + $0x190] sm:$0xff]  ;;  %v84_v15 = vld [vmem:[%s589_s1 + $0x1a8] sm:$0xff] }
  0x1f   :  { %v86_v16 = vld [vmem:[%s589_s1 + $0x1b8] sm:$0xff]  ;;  %v273_v17 = vpack.c.bf16 %v81_v14, %v79_v13  ;;  %v83_v19 = vld [vmem:[%s589_s1 + $0x1a0] sm:$0xff]  ;;  %v85_v20 = vld [vmem:[%s589_s1 + $0x1b0] sm:$0xff] }
  0x20   :  { %v275_v18 = vpack.c.bf16 %v86_v16, %v84_v15  ;;  %v88_v21 = vld [vmem:[%s589_s1 + $0x1c8] sm:$0xff]  ;;  %v90_v22 = vld [vmem:[%s589_s1 + $0x1d8] sm:$0xff]  ;;  %v277_v23 = vpack.c.bf16 %v85_v20, %v83_v19  ;;  %v87_v25 = vld [vmem:[%s589_s1 + $0x1c0] sm:$0xff] }
  0x21   :  { %254 = vmatpush1.bf16.msra.mxu0 %v253_v51  ;;  %310 = vmatpush1.bf16.msra.mxu1 %v253_v51  ;;  %v279_v24 = vpack.c.bf16 %v90_v22, %v88_v21  ;;  %v89_v26 = vld [vmem:[%s589_s1 + $0x1d0] sm:$0xff]  ;;  %v92_v27 = vld [vmem:[%s589_s1 + $0x1e8] sm:$0xff]  ;;  %v94_v28 = vld [vmem:[%s589_s1 + $0x1f8] sm:$0xff] }
  0x22   :  { %256 = vmatprep.subr.bf16.mxu0 %v255_v52  ;;  %295 = vmatprep.subr.bf16.mxu1 %v255_v52  ;;  %v281_v29 = vpack.c.bf16 %v89_v26, %v87_v25  ;;  %v283_v30 = vpack.c.bf16 %v94_v28, %v92_v27  ;;  %v91_v31 = vld [vmem:[%s589_s1 + $0x1e0] sm:$0xff]  ;;  %v93_v32 = vld [vmem:[%s589_s1 + $0x1f0] sm:$0xff] }
  0x23   :  { %v285_v33 = vpack.c.bf16 %v93_v32, %v91_v31  ;;  %v23_v34 = vld [vmem:[%s588_s0] sm:$0xff]  ;;  %v25_v35 = vld [vmem:[%s588_s0 + $0x10] sm:$0xff]  ;;  %s322_s0 = scalar_lea.vmem %s213_s15, 512 }
  0x24   :  { %v187_v39 = vld [vmem:[%s590_s2] sm:$0x3]  ;;  %p323_p0 = scmp.ne.s32.totalorder %s213_s15, %s322_s0  ;;  %p328_p2 = scmp.lt.s32.totalorder %s322_s0, %s322_s0 }
  0x25   :  { %258 = vmatpush1.bf16.msra.mxu0 %v257_v57  ;;  %311 = vmatpush1.bf16.msra.mxu1 %v257_v57  ;;  %v192_v41 = vrot.slane %v187_v39, %v191_v38  ;;  %v196_v42 = vrot.slane %v187_v39, %v195_v40 }
  0x26   :  { %260 = vmatprep.subr.bf16.mxu0 %v259_v58  ;;  %296 = vmatprep.subr.bf16.mxu1 %v259_v58  ;;  %p329_p3 = por %p328_p2, %p327_p1 }
  0x28   :  { %p330_p4 = pnand %p329_p3, %p323_p0 }
  0x29   :  { %262 = vmatpush1.bf16.msra.mxu0 %v261_v63  ;;  %312 = vmatpush1.bf16.msra.mxu1 %v261_v63 }
  0x2a   :  { %264 = vmatprep.subr.bf16.mxu0 %v263_v0  ;;  %297 = vmatprep.subr.bf16.mxu1 %v263_v0 }
  0x2d   :  { %266 = vmatpush1.bf16.msra.mxu0 %v265_v5  ;;  %313 = vmatpush1.bf16.msra.mxu1 %v265_v5 }
  0x2e   :  { %268 = vmatprep.subr.bf16.mxu0 %v267_v6  ;;  %298 = vmatprep.subr.bf16.mxu1 %v267_v6 }
  0x31   :  { %270 = vmatpush1.bf16.msra.mxu0 %v269_v11  ;;  %314 = vmatpush1.bf16.msra.mxu1 %v269_v11 }
  0x32   :  { %272 = vmatprep.subr.bf16.mxu0 %v271_v12  ;;  %299 = vmatprep.subr.bf16.mxu1 %v271_v12 }
  0x35   :  { %274 = vmatpush1.bf16.msra.mxu0 %v273_v17  ;;  %315 = vmatpush1.bf16.msra.mxu1 %v273_v17 }
  0x36   :  { %276 = vmatprep.subr.bf16.mxu0 %v275_v18  ;;  %300 = vmatprep.subr.bf16.mxu1 %v275_v18 }
  0x39   :  { %278 = vmatpush1.bf16.msra.mxu0 %v277_v23  ;;  %316 = vmatpush1.bf16.msra.mxu1 %v277_v23 }
  0x3a   :  { %280 = vmatprep.subr.bf16.mxu0 %v279_v24  ;;  %301 = vmatprep.subr.bf16.mxu1 %v279_v24 }
  0x3d   :  { %282 = vmatpush1.bf16.msra.mxu0 %v281_v29  ;;  %317 = vmatpush1.bf16.msra.mxu1 %v281_v29 }
  0x3e   :  { %284 = vmatprep.subr.bf16.mxu0 %v283_v30  ;;  %302 = vmatprep.subr.bf16.mxu1 %v283_v30 }
  0x41   :  { %286 = vmatpush1.bf16.msra.mxu0 %v285_v33  ;;  %318 = vmatpush1.bf16.msra.mxu1 %v285_v33 }
  0x44   :  { %160 = vmatmul.mubr.f32.vlgmr.msra.gmra.mrb[0].mxu0 %v23_v34  ;;  %166 = vmatmul.mubr.f32.vlgmr.msra.gmra.mrb[0].mxu1 %v25_v35 }
 0x117   :  { %v161_v43 = vpop.f32.mrb[0].mxu0  ;;  %v167_v44 = vpop.f32.mrb[0].mxu1 }
 0x118   :  { %v199_v45 = vadd.f32 %v192_v41, %v161_v43  ;;  %v201_v46 = vadd.f32 %v192_v41, %v167_v44  ;;  %v163_v47 = vpop.f32.mrb[1].mxu0  ;;  %v169_v48 = vpop.f32.mrb[1].mxu1 }
 0x119   :  { %v200_v49 = vadd.f32 %v196_v42, %v163_v47  ;;  %v202_v50 = vadd.f32 %v196_v42, %v169_v48 }
 0x11a   :  { %203 = vst [vmem:[#allocation3] sm:$0xff] %v199_v45  ;;  %205 = vst [vmem:[#allocation3 + $0x10] sm:$0xff] %v201_v46 }
 0x11b   :  { %204 = vst [vmem:[#allocation3 + $0x8] sm:$0xff] %v200_v49  ;;  %206 = vst [vmem:[#allocation3 + $0x18] sm:$0xff] %v202_v50 }
 0x11c   :  { %333 = shalt.err (!%p330_p4)
}
 0x11d   :  { %s334_s17 = scalar_lea.hbm %s591_s3, 512 }
 0x11e   :  { %p335_p5 = scmp.ne.s32.totalorder %s591_s3, %s334_s17  ;;  %p338_p6 = scmp.lt.u32.totalorder %s334_s17, %s591_s3 }
 0x120   :  { %p340_p7 = pnand %p338_p6, %p335_p5 }
 0x122   :  { %343 = shalt.err (!%p340_p7)
}
 0x123   :  { %s347_s22 = smov 256   ;;  %s348_s23 = smov 16  }
 0x124   :  { %218 = dma.vmem_to_hbm [thread:$0]  %s213_s15, 512, %s591_s3, [#allocation4], %s347_s22, %s347_s22, %s348_s23  }
 0x125   :  { %344 = dma.done.wait [#allocation4], 512  }
 0x126   :  { %345 = vsyncadd [#allocation4], 4294966784 }
 0x127   :  { %222 = vsyncpa [#allocation4], 1 }

</bundles_post_ra>
